<compile_context>
chip_gen: v5e
topology: v5e:2x2
jax: 0.10.0
libtpu: 0.0.40
codegen_flags: <defaults>
</compile_context>

<pallas_src>
import jax
import jax.numpy as jnp
import numpy as np
from jax.experimental import pallas as pl
from jax.experimental.pallas import tpu as pltpu


# ----------------------------- fused Pallas kernel -----------------------------
def prim_small_kernel(x_ref, c1_ref, b1_ref, c2_ref, b2_ref,
                      w1_ref, fb1_ref, w2_ref, fb2_ref, o_ref):
    f32, bf16 = jnp.float32, jnp.bfloat16

    # ---- conv1 (1->4, k=8, s=2) + ReLU: 4 kw-paired bf16 MXU dots ----------------
    # Lane l of h1 is the stride-1 x offset; the real conv outputs live at l = 2*ox.
    # RHS = [img ; img shifted right by 1 lane] stacked along K (K=80 <= 128), so
    # two kernel columns (kw=2j, 2j+1) are folded into each dot.
    x = x_ref[0, 0, :, :]                                              # (40, 40) f32
    img2 = jnp.concatenate([x, pltpu.roll(x, shift=1, axis=1)],
                           axis=0).astype(bf16)                        # (80, 40)
    h1 = jnp.dot(c1_ref[0], img2[:, 1:34], preferred_element_type=f32)
    for j in range(1, 4):
        h1 = h1 + jnp.dot(c1_ref[j], img2[:, 2 * j + 1:2 * j + 34],
                          preferred_element_type=f32)
    h1 = jnp.maximum(h1 + b1_ref[...], 0.0).astype(bf16)               # (68, 33)

    # ---- conv2 (4->4, k=4, s=1) + ReLU: 4 bf16 MXU dots (rows padded 56->64) -----
    h2 = jnp.dot(c2_ref[0], h1[:, 0:27], preferred_element_type=f32)
    for kw in range(1, 4):
        h2 = h2 + jnp.dot(c2_ref[kw], h1[:, 2 * kw:2 * kw + 27],
                          preferred_element_type=f32)
    h2 = jnp.maximum(h2 + b2_ref[...], 0.0)                            # (64, 27) f32

    # ---- fc1 (784->32) + ReLU: 7 x-paired bf16 MXU dots --------------------------
    # RHS = [h2 shifted right 2 lanes ; h2] (K=128).  The flatten-column pair
    # (x2=2xp, 2xp+1) is read out at result lane 4*xp+2 with a one-hot lane mask.
    hh = jnp.concatenate([pltpu.roll(h2, shift=2, axis=1), h2],
                         axis=0).astype(bf16)                          # (128, 27)
    lane = jax.lax.broadcasted_iota(jnp.int32, (32, 27), 1)
    zacc = jnp.zeros((32, 27), f32)
    for xp in range(7):
        p = jnp.dot(w1_ref[xp], hh, preferred_element_type=f32)        # (32, 27)
        zacc = zacc + jnp.where(lane == 4 * xp + 2, p, 0.0)
    z = jnp.maximum(jnp.sum(zacc, axis=1, keepdims=True) + fb1_ref[...], 0.0)  # (32, 1)

    # ---- fc2 (32->4) + softmax: f32 on (4,1), no lane replication ----------------
    logits = jnp.dot(w2_ref[...], z, preferred_element_type=f32) + fb2_ref[...]   # (4, 1)
    m = jnp.max(logits, axis=0, keepdims=True)
    e = jnp.exp(logits - m)
    o_ref[...] = e / jnp.sum(e, axis=0, keepdims=True)


def _fused_forward(x_nchw, p):
    def vmem():
        return pl.BlockSpec(memory_space=pltpu.MemorySpace.VMEM)

    return pl.pallas_call(
        prim_small_kernel,
        out_shape=jax.ShapeDtypeStruct((4, 1), jnp.float32),
        in_specs=[vmem() for _ in range(9)],
        out_specs=vmem(),
        cost_estimate=pl.CostEstimate(flops=600_000, bytes_accessed=150_000,
                                      transcendentals=8),
    )(x_nchw, p["C1"], p["b1"], p["C2"], p["b2"],
      p["W1p"], p["fb1"], p["W2"], p["fb2"])


def prim_small_forward(x_nchw, prepped):
    # Whole network in ONE pallas_call; the only host-side op is the free
    # (4,1)->(4,) reshape of the result.
    return _fused_forward(x_nchw, prepped)[:, 0]                       # (4,)


# ----------------------------- one-time weight packing (outside jit) -----------------------------
def prepare_params(params):
    w1 = np.asarray(params["conv1_w"], np.float32)   # (4, 1, 8, 8)
    b1 = np.asarray(params["conv1_b"], np.float32)   # (4,)
    w2 = np.asarray(params["conv2_w"], np.float32)   # (4, 4, 4, 4)
    b2 = np.asarray(params["conv2_b"], np.float32)   # (4,)
    fw1 = np.asarray(params["fc1_w"], np.float32)    # (32, 784)
    fb1 = np.asarray(params["fc1_b"], np.float32)    # (32,)
    fw2 = np.asarray(params["fc2_w"], np.float32)    # (4, 32)
    fb2 = np.asarray(params["fc2_b"], np.float32)    # (4,)

    # conv1, kw-paired.  Term j slices IMG2[:, 2j+1 : 2j+34] where
    # IMG2 = [img ; img shifted right 1 lane]: rows 0..39 see img col l+2j+1 (kw=2j+1),
    # rows 40..79 see img col l+2j (kw=2j).  Output row = c*17 + oy, contraction row = 2*oy + kh.
    C1 = np.zeros((4, 68, 80), np.float32)
    for j in range(4):
        for c in range(4):
            for oy in range(17):
                r = c * 17 + oy
                for kh in range(8):
                    C1[j, r, 2 * oy + kh] = w1[c, 0, kh, 2 * j + 1]
                    C1[j, r, 40 + 2 * oy + kh] = w1[c, 0, kh, 2 * j]
    b1col = np.repeat(b1, 17).reshape(68, 1)

    # conv2 (unpaired over kw): term kw slices h1[:, 2kw : 2kw+27]; rows padded 56 -> 64
    # so the later fc1 sublane-concat offset (64) is bf16-tile aligned.
    C2 = np.zeros((4, 64, 68), np.float32)
    for kw in range(4):
        for o in range(4):
            for y in range(14):
                r = o * 14 + y
                for c in range(4):
                    for kh in range(4):
                        C2[kw, r, c * 17 + y + kh] = w2[o, c, kh, kw]
    b2col = np.zeros((64, 1), np.float32)
    b2col[:56, 0] = np.repeat(b2, 14)

    # fc1, x-paired.  RHS in-kernel = [roll(h2, +2 lanes) ; h2] (128, 27); at result
    # lane 4*xp+2 the rolled half reads x2=2*xp and the plain half reads x2=2*xp+1.
    # torch.flatten order (c*196 + y*14 + x) is baked in here.
    fw1r = fw1.reshape(32, 4, 14, 14)                # [h, c, y, x]
    W1p = np.zeros((7, 32, 128), np.float32)
    for xp in range(7):
        W1p[xp, :, 0:56] = fw1r[:, :, :, 2 * xp].reshape(32, 56)
        W1p[xp, :, 64:120] = fw1r[:, :, :, 2 * xp + 1].reshape(32, 56)
    fb1col = fb1.reshape(32, 1)
    fb2col = fb2.reshape(4, 1)

    bf = jnp.bfloat16
    return {
        "C1": jnp.asarray(C1, dtype=bf), "b1": jnp.asarray(b1col),
        "C2": jnp.asarray(C2, dtype=bf), "b2": jnp.asarray(b2col),
        "W1p": jnp.asarray(W1p, dtype=bf), "fb1": jnp.asarray(fb1col),
        "W2": jnp.asarray(fw2), "fb2": jnp.asarray(fb2col),
    }


# ----------------------------- pure-JAX reference (for verification) -----------------------------
def reference_forward(x_nchw, params):
    hi = jax.lax.Precision.HIGHEST
    y = jax.lax.conv_general_dilated(
        x_nchw, params["conv1_w"], (2, 2), "VALID",
        dimension_numbers=("NCHW", "OIHW", "NCHW"), precision=hi)
    y = jax.nn.relu(y + params["conv1_b"].reshape(1, 4, 1, 1))
    y = jax.lax.conv_general_dilated(
        y, params["conv2_w"], (1, 1), "VALID",
        dimension_numbers=("NCHW", "OIHW", "NCHW"), precision=hi)
    y = jax.nn.relu(y + params["conv2_b"].reshape(1, 4, 1, 1))
    flat = y.reshape(-1)                                               # torch.flatten order
    h = jax.nn.relu(jnp.dot(params["fc1_w"], flat, precision=hi) + params["fc1_b"])
    logits = jnp.dot(params["fc2_w"], h, precision=hi) + params["fc2_b"]
    return jax.nn.softmax(logits)


# ----------------------------- deterministic params -----------------------------
def init_params(key):
    ks = jax.random.split(key, 8)
    s = 0.05
    return {
        "conv1_w": jax.random.normal(ks[0], (4, 1, 8, 8), jnp.float32) * s,
        "conv1_b": jax.random.normal(ks[1], (4,), jnp.float32) * s,
        "conv2_w": jax.random.normal(ks[2], (4, 4, 4, 4), jnp.float32) * s,
        "conv2_b": jax.random.normal(ks[3], (4,), jnp.float32) * s,
        "fc1_w": jax.random.normal(ks[4], (32, 4 * 14 * 14), jnp.float32) * s,
        "fc1_b": jax.random.normal(ks[5], (32,), jnp.float32) * s,
        "fc2_w": jax.random.normal(ks[6], (4, 32), jnp.float32) * s,
        "fc2_b": jax.random.normal(ks[7], (4,), jnp.float32) * s,
    }


if __name__ == "__main__":
    key = jax.random.PRNGKey(0)
    pkey, xkey = jax.random.split(key)
    params = init_params(pkey)
    prepped = prepare_params(params)   # one-time weight packing, outside jit
    # fc1 expects 4*14*14 = 784 features -> spatial 40, batch 1, 1 channel.
    x = jax.random.normal(xkey, (1, 1, 40, 40), jnp.float32)

    fwd = jax.jit(prim_small_forward)
    out = jax.block_until_ready(fwd(x, prepped))
    ref = jax.block_until_ready(reference_forward(x, params))

    assert out.shape == (4,), out.shape
    assert bool(jnp.isfinite(out).all())
    assert abs(float(jnp.sum(out)) - 1.0) < 1e-3                 # softmax sums to 1
    # bf16 MXU operands with f32 accumulation vs. full-f32 reference.
    assert bool(jnp.allclose(out, ref, atol=5e-3, rtol=0.0)), (out, ref)
    print("KERNEL_OK")
</pallas_src>

<mosaic_0001>
module attributes {stable_mosaic.version = 11 : i64} {
  func.func @prim_small_kernel(%arg0: memref<1x1x40x40xf32, #tpu.memory_space<vmem>>, %arg1: memref<4x68x80xbf16, #tpu.memory_space<vmem>>, %arg2: memref<68x1xf32, #tpu.memory_space<vmem>>, %arg3: memref<4x64x68xbf16, #tpu.memory_space<vmem>>, %arg4: memref<64x1xf32, #tpu.memory_space<vmem>>, %arg5: memref<7x32x128xbf16, #tpu.memory_space<vmem>>, %arg6: memref<32x1xf32, #tpu.memory_space<vmem>>, %arg7: memref<4x32xf32, #tpu.memory_space<vmem>>, %arg8: memref<4x1xf32, #tpu.memory_space<vmem>>, %arg9: memref<4x1xf32, #tpu.memory_space<vmem>>) attributes {dimension_semantics = [], scalar_prefetch = 0 : i64, scratch_operands = 0 : i64, tpu.core_type = #tpu.core_type<tc>} {
    %c0 = arith.constant 0 : index
    %c0_0 = arith.constant 0 : index
    %c0_1 = arith.constant 0 : index
    %c0_2 = arith.constant 0 : index
    %0 = vector.load %arg0[%c0, %c0_0, %c0_1, %c0_2] : memref<1x1x40x40xf32, #tpu.memory_space<vmem>>, vector<1x1x40x40xf32>
    %1 = vector.shape_cast %0 : vector<1x1x40x40xf32> to vector<40x40xf32>
    %c1_i32 = arith.constant 1 : i32
    %2 = tpu.dynamic_rotate %1 by %c1_i32 dim 1 : vector<40x40xf32>, i32 -> vector<40x40xf32>
    %3 = tpu.concatenate %1, %2 in 0 : vector<40x40xf32>, vector<40x40xf32> -> vector<80x40xf32>
    %4 = arith.truncf %3 : vector<80x40xf32> to vector<80x40xbf16>
    %c0_3 = arith.constant 0 : index
    %c0_4 = arith.constant 0 : index
    %c0_5 = arith.constant 0 : index
    %5 = vector.load %arg1[%c0_3, %c0_4, %c0_5] : memref<4x68x80xbf16, #tpu.memory_space<vmem>>, vector<1x68x80xbf16>
    %6 = vector.shape_cast %5 : vector<1x68x80xbf16> to vector<68x80xbf16>
    %7 = vector.extract_strided_slice %4 {offsets = [0, 1], sizes = [80, 33], strides = [1, 1]} : vector<80x40xbf16> to vector<80x33xbf16>
    %cst = arith.constant dense<0.000000e+00> : vector<68x33xf32>
    %8 = tpu.matmul %6, %7, %cst {dimension_numbers = #tpu.dot_dimension_numbers<[1], [0], [0], [1], [0, 0, 1, 1], [], []>} : vector<68x80xbf16>, vector<80x33xbf16>, vector<68x33xf32> -> vector<68x33xf32>
    %c1 = arith.constant 1 : index
    %c0_6 = arith.constant 0 : index
    %c0_7 = arith.constant 0 : index
    %9 = vector.load %arg1[%c1, %c0_6, %c0_7] : memref<4x68x80xbf16, #tpu.memory_space<vmem>>, vector<1x68x80xbf16>
    %10 = vector.shape_cast %9 : vector<1x68x80xbf16> to vector<68x80xbf16>
    %11 = vector.extract_strided_slice %4 {offsets = [0, 3], sizes = [80, 33], strides = [1, 1]} : vector<80x40xbf16> to vector<80x33xbf16>
    %cst_8 = arith.constant dense<0.000000e+00> : vector<68x33xf32>
    %12 = tpu.matmul %10, %11, %cst_8 {dimension_numbers = #tpu.dot_dimension_numbers<[1], [0], [0], [1], [0, 0, 1, 1], [], []>} : vector<68x80xbf16>, vector<80x33xbf16>, vector<68x33xf32> -> vector<68x33xf32>
    %13 = arith.addf %8, %12 : vector<68x33xf32>
    %c2 = arith.constant 2 : index
    %c0_9 = arith.constant 0 : index
    %c0_10 = arith.constant 0 : index
    %14 = vector.load %arg1[%c2, %c0_9, %c0_10] : memref<4x68x80xbf16, #tpu.memory_space<vmem>>, vector<1x68x80xbf16>
    %15 = vector.shape_cast %14 : vector<1x68x80xbf16> to vector<68x80xbf16>
    %16 = vector.extract_strided_slice %4 {offsets = [0, 5], sizes = [80, 33], strides = [1, 1]} : vector<80x40xbf16> to vector<80x33xbf16>
    %cst_11 = arith.constant dense<0.000000e+00> : vector<68x33xf32>
    %17 = tpu.matmul %15, %16, %cst_11 {dimension_numbers = #tpu.dot_dimension_numbers<[1], [0], [0], [1], [0, 0, 1, 1], [], []>} : vector<68x80xbf16>, vector<80x33xbf16>, vector<68x33xf32> -> vector<68x33xf32>
    %18 = arith.addf %13, %17 : vector<68x33xf32>
    %c3 = arith.constant 3 : index
    %c0_12 = arith.constant 0 : index
    %c0_13 = arith.constant 0 : index
    %19 = vector.load %arg1[%c3, %c0_12, %c0_13] : memref<4x68x80xbf16, #tpu.memory_space<vmem>>, vector<1x68x80xbf16>
    %20 = vector.shape_cast %19 : vector<1x68x80xbf16> to vector<68x80xbf16>
    %21 = vector.extract_strided_slice %4 {offsets = [0, 7], sizes = [80, 33], strides = [1, 1]} : vector<80x40xbf16> to vector<80x33xbf16>
    %cst_14 = arith.constant dense<0.000000e+00> : vector<68x33xf32>
    %22 = tpu.matmul %20, %21, %cst_14 {dimension_numbers = #tpu.dot_dimension_numbers<[1], [0], [0], [1], [0, 0, 1, 1], [], []>} : vector<68x80xbf16>, vector<80x33xbf16>, vector<68x33xf32> -> vector<68x33xf32>
    %23 = arith.addf %18, %22 : vector<68x33xf32>
    %c0_15 = arith.constant 0 : index
    %c0_16 = arith.constant 0 : index
    %24 = vector.load %arg2[%c0_15, %c0_16] : memref<68x1xf32, #tpu.memory_space<vmem>>, vector<68x1xf32>
    %25 = vector.broadcast %24 : vector<68x1xf32> to vector<68x33xf32>
    %26 = arith.addf %23, %25 : vector<68x33xf32>
    %cst_17 = arith.constant 0.000000e+00 : f32
    %27 = vector.broadcast %cst_17 : f32 to vector<68x33xf32>
    %28 = arith.maximumf %26, %27 : vector<68x33xf32>
    %29 = arith.truncf %28 : vector<68x33xf32> to vector<68x33xbf16>
    %c0_18 = arith.constant 0 : index
    %c0_19 = arith.constant 0 : index
    %c0_20 = arith.constant 0 : index
    %30 = vector.load %arg3[%c0_18, %c0_19, %c0_20] : memref<4x64x68xbf16, #tpu.memory_space<vmem>>, vector<1x64x68xbf16>
    %31 = vector.shape_cast %30 : vector<1x64x68xbf16> to vector<64x68xbf16>
    %32 = vector.extract_strided_slice %29 {offsets = [0, 0], sizes = [68, 27], strides = [1, 1]} : vector<68x33xbf16> to vector<68x27xbf16>
    %cst_21 = arith.constant dense<0.000000e+00> : vector<64x27xf32>
    %33 = tpu.matmul %31, %32, %cst_21 {dimension_numbers = #tpu.dot_dimension_numbers<[1], [0], [0], [1], [0, 0, 1, 1], [], []>} : vector<64x68xbf16>, vector<68x27xbf16>, vector<64x27xf32> -> vector<64x27xf32>
    %c1_22 = arith.constant 1 : index
    %c0_23 = arith.constant 0 : index
    %c0_24 = arith.constant 0 : index
    %34 = vector.load %arg3[%c1_22, %c0_23, %c0_24] : memref<4x64x68xbf16, #tpu.memory_space<vmem>>, vector<1x64x68xbf16>
    %35 = vector.shape_cast %34 : vector<1x64x68xbf16> to vector<64x68xbf16>
    %36 = vector.extract_strided_slice %29 {offsets = [0, 2], sizes = [68, 27], strides = [1, 1]} : vector<68x33xbf16> to vector<68x27xbf16>
    %cst_25 = arith.constant dense<0.000000e+00> : vector<64x27xf32>
    %37 = tpu.matmul %35, %36, %cst_25 {dimension_numbers = #tpu.dot_dimension_numbers<[1], [0], [0], [1], [0, 0, 1, 1], [], []>} : vector<64x68xbf16>, vector<68x27xbf16>, vector<64x27xf32> -> vector<64x27xf32>
    %38 = arith.addf %33, %37 : vector<64x27xf32>
    %c2_26 = arith.constant 2 : index
    %c0_27 = arith.constant 0 : index
    %c0_28 = arith.constant 0 : index
    %39 = vector.load %arg3[%c2_26, %c0_27, %c0_28] : memref<4x64x68xbf16, #tpu.memory_space<vmem>>, vector<1x64x68xbf16>
    %40 = vector.shape_cast %39 : vector<1x64x68xbf16> to vector<64x68xbf16>
    %41 = vector.extract_strided_slice %29 {offsets = [0, 4], sizes = [68, 27], strides = [1, 1]} : vector<68x33xbf16> to vector<68x27xbf16>
    %cst_29 = arith.constant dense<0.000000e+00> : vector<64x27xf32>
    %42 = tpu.matmul %40, %41, %cst_29 {dimension_numbers = #tpu.dot_dimension_numbers<[1], [0], [0], [1], [0, 0, 1, 1], [], []>} : vector<64x68xbf16>, vector<68x27xbf16>, vector<64x27xf32> -> vector<64x27xf32>
    %43 = arith.addf %38, %42 : vector<64x27xf32>
    %c3_30 = arith.constant 3 : index
    %c0_31 = arith.constant 0 : index
    %c0_32 = arith.constant 0 : index
    %44 = vector.load %arg3[%c3_30, %c0_31, %c0_32] : memref<4x64x68xbf16, #tpu.memory_space<vmem>>, vector<1x64x68xbf16>
    %45 = vector.shape_cast %44 : vector<1x64x68xbf16> to vector<64x68xbf16>
    %46 = vector.extract_strided_slice %29 {offsets = [0, 6], sizes = [68, 27], strides = [1, 1]} : vector<68x33xbf16> to vector<68x27xbf16>
    %cst_33 = arith.constant dense<0.000000e+00> : vector<64x27xf32>
    %47 = tpu.matmul %45, %46, %cst_33 {dimension_numbers = #tpu.dot_dimension_numbers<[1], [0], [0], [1], [0, 0, 1, 1], [], []>} : vector<64x68xbf16>, vector<68x27xbf16>, vector<64x27xf32> -> vector<64x27xf32>
    %48 = arith.addf %43, %47 : vector<64x27xf32>
    %c0_34 = arith.constant 0 : index
    %c0_35 = arith.constant 0 : index
    %49 = vector.load %arg4[%c0_34, %c0_35] : memref<64x1xf32, #tpu.memory_space<vmem>>, vector<64x1xf32>
    %50 = vector.broadcast %49 : vector<64x1xf32> to vector<64x27xf32>
    %51 = arith.addf %48, %50 : vector<64x27xf32>
    %cst_36 = arith.constant 0.000000e+00 : f32
    %52 = vector.broadcast %cst_36 : f32 to vector<64x27xf32>
    %53 = arith.maximumf %51, %52 : vector<64x27xf32>
    %c2_i32 = arith.constant 2 : i32
    %54 = tpu.dynamic_rotate %53 by %c2_i32 dim 1 : vector<64x27xf32>, i32 -> vector<64x27xf32>
    %55 = tpu.concatenate %54, %53 in 0 : vector<64x27xf32>, vector<64x27xf32> -> vector<128x27xf32>
    %56 = arith.truncf %55 : vector<128x27xf32> to vector<128x27xbf16>
    %57 = tpu.iota {dimensions = array<i32: 1>} : vector<32x27xi32>
    %cst_37 = arith.constant 0.000000e+00 : f32
    %58 = vector.broadcast %cst_37 : f32 to vector<32x27xf32>
    %c0_38 = arith.constant 0 : index
    %c0_39 = arith.constant 0 : index
    %c0_40 = arith.constant 0 : index
    %59 = vector.load %arg5[%c0_38, %c0_39, %c0_40] : memref<7x32x128xbf16, #tpu.memory_space<vmem>>, vector<1x32x128xbf16>
    %60 = vector.shape_cast %59 : vector<1x32x128xbf16> to vector<32x128xbf16>
    %cst_41 = arith.constant dense<0.000000e+00> : vector<32x27xf32>
    %61 = tpu.matmul %60, %56, %cst_41 {dimension_numbers = #tpu.dot_dimension_numbers<[1], [0], [0], [1], [0, 0, 1, 1], [], []>} : vector<32x128xbf16>, vector<128x27xbf16>, vector<32x27xf32> -> vector<32x27xf32>
    %c2_i32_42 = arith.constant 2 : i32
    %62 = vector.broadcast %c2_i32_42 : i32 to vector<32x27xi32>
    %63 = arith.cmpi eq, %57, %62 : vector<32x27xi32>
    %cst_43 = arith.constant 0.000000e+00 : f32
    %64 = vector.broadcast %cst_43 : f32 to vector<32x27xf32>
    %65 = arith.select %63, %61, %64 : vector<32x27xi1>, vector<32x27xf32>
    %66 = arith.addf %58, %65 : vector<32x27xf32>
    %c1_44 = arith.constant 1 : index
    %c0_45 = arith.constant 0 : index
    %c0_46 = arith.constant 0 : index
    %67 = vector.load %arg5[%c1_44, %c0_45, %c0_46] : memref<7x32x128xbf16, #tpu.memory_space<vmem>>, vector<1x32x128xbf16>
    %68 = vector.shape_cast %67 : vector<1x32x128xbf16> to vector<32x128xbf16>
    %cst_47 = arith.constant dense<0.000000e+00> : vector<32x27xf32>
    %69 = tpu.matmul %68, %56, %cst_47 {dimension_numbers = #tpu.dot_dimension_numbers<[1], [0], [0], [1], [0, 0, 1, 1], [], []>} : vector<32x128xbf16>, vector<128x27xbf16>, vector<32x27xf32> -> vector<32x27xf32>
    %c6_i32 = arith.constant 6 : i32
    %70 = vector.broadcast %c6_i32 : i32 to vector<32x27xi32>
    %71 = arith.cmpi eq, %57, %70 : vector<32x27xi32>
    %cst_48 = arith.constant 0.000000e+00 : f32
    %72 = vector.broadcast %cst_48 : f32 to vector<32x27xf32>
    %73 = arith.select %71, %69, %72 : vector<32x27xi1>, vector<32x27xf32>
    %74 = arith.addf %66, %73 : vector<32x27xf32>
    %c2_49 = arith.constant 2 : index
    %c0_50 = arith.constant 0 : index
    %c0_51 = arith.constant 0 : index
    %75 = vector.load %arg5[%c2_49, %c0_50, %c0_51] : memref<7x32x128xbf16, #tpu.memory_space<vmem>>, vector<1x32x128xbf16>
    %76 = vector.shape_cast %75 : vector<1x32x128xbf16> to vector<32x128xbf16>
    %cst_52 = arith.constant dense<0.000000e+00> : vector<32x27xf32>
    %77 = tpu.matmul %76, %56, %cst_52 {dimension_numbers = #tpu.dot_dimension_numbers<[1], [0], [0], [1], [0, 0, 1, 1], [], []>} : vector<32x128xbf16>, vector<128x27xbf16>, vector<32x27xf32> -> vector<32x27xf32>
    %c10_i32 = arith.constant 10 : i32
    %78 = vector.broadcast %c10_i32 : i32 to vector<32x27xi32>
    %79 = arith.cmpi eq, %57, %78 : vector<32x27xi32>
    %cst_53 = arith.constant 0.000000e+00 : f32
    %80 = vector.broadcast %cst_53 : f32 to vector<32x27xf32>
    %81 = arith.select %79, %77, %80 : vector<32x27xi1>, vector<32x27xf32>
    %82 = arith.addf %74, %81 : vector<32x27xf32>
    %c3_54 = arith.constant 3 : index
    %c0_55 = arith.constant 0 : index
    %c0_56 = arith.constant 0 : index
    %83 = vector.load %arg5[%c3_54, %c0_55, %c0_56] : memref<7x32x128xbf16, #tpu.memory_space<vmem>>, vector<1x32x128xbf16>
    %84 = vector.shape_cast %83 : vector<1x32x128xbf16> to vector<32x128xbf16>
    %cst_57 = arith.constant dense<0.000000e+00> : vector<32x27xf32>
    %85 = tpu.matmul %84, %56, %cst_57 {dimension_numbers = #tpu.dot_dimension_numbers<[1], [0], [0], [1], [0, 0, 1, 1], [], []>} : vector<32x128xbf16>, vector<128x27xbf16>, vector<32x27xf32> -> vector<32x27xf32>
    %c14_i32 = arith.constant 14 : i32
    %86 = vector.broadcast %c14_i32 : i32 to vector<32x27xi32>
    %87 = arith.cmpi eq, %57, %86 : vector<32x27xi32>
    %cst_58 = arith.constant 0.000000e+00 : f32
    %88 = vector.broadcast %cst_58 : f32 to vector<32x27xf32>
    %89 = arith.select %87, %85, %88 : vector<32x27xi1>, vector<32x27xf32>
    %90 = arith.addf %82, %89 : vector<32x27xf32>
    %c4 = arith.constant 4 : index
    %c0_59 = arith.constant 0 : index
    %c0_60 = arith.constant 0 : index
    %91 = vector.load %arg5[%c4, %c0_59, %c0_60] : memref<7x32x128xbf16, #tpu.memory_space<vmem>>, vector<1x32x128xbf16>
    %92 = vector.shape_cast %91 : vector<1x32x128xbf16> to vector<32x128xbf16>
    %cst_61 = arith.constant dense<0.000000e+00> : vector<32x27xf32>
    %93 = tpu.matmul %92, %56, %cst_61 {dimension_numbers = #tpu.dot_dimension_numbers<[1], [0], [0], [1], [0, 0, 1, 1], [], []>} : vector<32x128xbf16>, vector<128x27xbf16>, vector<32x27xf32> -> vector<32x27xf32>
    %c18_i32 = arith.constant 18 : i32
    %94 = vector.broadcast %c18_i32 : i32 to vector<32x27xi32>
    %95 = arith.cmpi eq, %57, %94 : vector<32x27xi32>
    %cst_62 = arith.constant 0.000000e+00 : f32
    %96 = vector.broadcast %cst_62 : f32 to vector<32x27xf32>
    %97 = arith.select %95, %93, %96 : vector<32x27xi1>, vector<32x27xf32>
    %98 = arith.addf %90, %97 : vector<32x27xf32>
    %c5 = arith.constant 5 : index
    %c0_63 = arith.constant 0 : index
    %c0_64 = arith.constant 0 : index
    %99 = vector.load %arg5[%c5, %c0_63, %c0_64] : memref<7x32x128xbf16, #tpu.memory_space<vmem>>, vector<1x32x128xbf16>
    %100 = vector.shape_cast %99 : vector<1x32x128xbf16> to vector<32x128xbf16>
    %cst_65 = arith.constant dense<0.000000e+00> : vector<32x27xf32>
    %101 = tpu.matmul %100, %56, %cst_65 {dimension_numbers = #tpu.dot_dimension_numbers<[1], [0], [0], [1], [0, 0, 1, 1], [], []>} : vector<32x128xbf16>, vector<128x27xbf16>, vector<32x27xf32> -> vector<32x27xf32>
    %c22_i32 = arith.constant 22 : i32
    %102 = vector.broadcast %c22_i32 : i32 to vector<32x27xi32>
    %103 = arith.cmpi eq, %57, %102 : vector<32x27xi32>
    %cst_66 = arith.constant 0.000000e+00 : f32
    %104 = vector.broadcast %cst_66 : f32 to vector<32x27xf32>
    %105 = arith.select %103, %101, %104 : vector<32x27xi1>, vector<32x27xf32>
    %106 = arith.addf %98, %105 : vector<32x27xf32>
    %c6 = arith.constant 6 : index
    %c0_67 = arith.constant 0 : index
    %c0_68 = arith.constant 0 : index
    %107 = vector.load %arg5[%c6, %c0_67, %c0_68] : memref<7x32x128xbf16, #tpu.memory_space<vmem>>, vector<1x32x128xbf16>
    %108 = vector.shape_cast %107 : vector<1x32x128xbf16> to vector<32x128xbf16>
    %cst_69 = arith.constant dense<0.000000e+00> : vector<32x27xf32>
    %109 = tpu.matmul %108, %56, %cst_69 {dimension_numbers = #tpu.dot_dimension_numbers<[1], [0], [0], [1], [0, 0, 1, 1], [], []>} : vector<32x128xbf16>, vector<128x27xbf16>, vector<32x27xf32> -> vector<32x27xf32>
    %c26_i32 = arith.constant 26 : i32
    %110 = vector.broadcast %c26_i32 : i32 to vector<32x27xi32>
    %111 = arith.cmpi eq, %57, %110 : vector<32x27xi32>
    %cst_70 = arith.constant 0.000000e+00 : f32
    %112 = vector.broadcast %cst_70 : f32 to vector<32x27xf32>
    %113 = arith.select %111, %109, %112 : vector<32x27xi1>, vector<32x27xf32>
    %114 = arith.addf %106, %113 : vector<32x27xf32>
    %cst_71 = arith.constant dense<0.000000e+00> : vector<32xf32>
    %115 = vector.multi_reduction <add>, %114, %cst_71 [1] : vector<32x27xf32> to vector<32xf32>
    %116 = vector.shape_cast %115 : vector<32xf32> to vector<32x1xf32>
    %c0_72 = arith.constant 0 : index
    %c0_73 = arith.constant 0 : index
    %117 = vector.load %arg6[%c0_72, %c0_73] : memref<32x1xf32, #tpu.memory_space<vmem>>, vector<32x1xf32>
    %118 = arith.addf %116, %117 : vector<32x1xf32>
    %cst_74 = arith.constant 0.000000e+00 : f32
    %119 = vector.broadcast %cst_74 : f32 to vector<32x1xf32>
    %120 = arith.maximumf %118, %119 : vector<32x1xf32>
    %c0_75 = arith.constant 0 : index
    %c0_76 = arith.constant 0 : index
    %121 = vector.load %arg7[%c0_75, %c0_76] : memref<4x32xf32, #tpu.memory_space<vmem>>, vector<4x32xf32>
    %cst_77 = arith.constant dense<0.000000e+00> : vector<4x1xf32>
    %122 = tpu.matmul %121, %120, %cst_77 {dimension_numbers = #tpu.dot_dimension_numbers<[1], [0], [0], [1], [0, 0, 1, 1], [], []>} : vector<4x32xf32>, vector<32x1xf32>, vector<4x1xf32> -> vector<4x1xf32>
    %c0_78 = arith.constant 0 : index
    %c0_79 = arith.constant 0 : index
    %123 = vector.load %arg8[%c0_78, %c0_79] : memref<4x1xf32, #tpu.memory_space<vmem>>, vector<4x1xf32>
    %124 = arith.addf %122, %123 : vector<4x1xf32>
    %cst_80 = arith.constant dense<0xFF800000> : vector<1xf32>
    %125 = vector.multi_reduction <maximumf>, %124, %cst_80 [0] : vector<4x1xf32> to vector<1xf32>
    %126 = vector.shape_cast %125 : vector<1xf32> to vector<1x1xf32>
    %127 = vector.broadcast %126 : vector<1x1xf32> to vector<4x1xf32>
    %128 = arith.subf %124, %127 : vector<4x1xf32>
    %129 = math.exp %128 : vector<4x1xf32>
    %cst_81 = arith.constant dense<0.000000e+00> : vector<1xf32>
    %130 = vector.multi_reduction <add>, %129, %cst_81 [0] : vector<4x1xf32> to vector<1xf32>
    %131 = vector.shape_cast %130 : vector<1xf32> to vector<1x1xf32>
    %132 = vector.broadcast %131 : vector<1x1xf32> to vector<4x1xf32>
    %133 = arith.divf %129, %132 : vector<4x1xf32>
    %c0_82 = arith.constant 0 : index
    %c0_83 = arith.constant 0 : index
    %134 = vector.load %arg9[%c0_82, %c0_83] : memref<4x1xf32, #tpu.memory_space<vmem>>, vector<4x1xf32>
    tpu.vector_store %arg9[%c0_82, %c0_83], %133 {strides = array<i32>} : memref<4x1xf32, #tpu.memory_space<vmem>>, vector<4x1xf32>,
    return
  }
}

</mosaic_0001>

<bundles_post_ra>
// kernel: prim_small_forward.1
= control target key start
LH: loop header
LB: loop body
LE: loop exit
PB: predicated region body
PF: predicated region fallthrough
CT: control target
= control target key end

     0   :  { %s2035_s15 = smov 40   ;;  %vm38_vm0 = vcmask 1047872   ;;  %s2037_s20 = smov 121   ;;  %vm181_vm1 = vcmask 654336   ;;  %vm694_vm2 = vcmask 1041408   ;;  %vm681_vm3 = vcmask 556032   ;;  %s2616_s0 = inlined_call_operand.vmem [shape: f32[1,1,40,40], index: 0, kind: input, shape index: {}]   ;;  %s2617_s2 = inlined_call_operand.vmem [shape: f32[68,1], index: 2, kind: input, shape index: {}]   ;;  %s2618_s1 = inlined_call_operand.vmem [shape: bf16[4,68,80], index: 1, kind: input, shape index: {}]   ;;  %s2619_s4 = inlined_call_operand.vmem [shape: f32[64,1], index: 4, kind: input, shape index: {}]   ;;  %s2620_s3 = inlined_call_operand.vmem [shape: bf16[4,64,68], index: 3, kind: input, shape index: {}]   ;;  %s2621_s5 = inlined_call_operand.vmem [shape: bf16[7,32,128], index: 5, kind: input, shape index: {}]   ;;  %s2622_s6 = inlined_call_operand.vmem [shape: f32[32,1], index: 6, kind: input, shape index: {}]   ;;  %s2623_s7 = inlined_call_operand.vmem [shape: f32[4,32], index: 7, kind: input, shape index: {}]   ;;  %s2624_s8 = inlined_call_operand.vmem [shape: f32[4,1], index: 8, kind: input, shape index: {}]   ;;  %s2625_s9 = inlined_call_operand.vmem [shape: f32[4,1], index: 9, kind: output, shape index: {}]  }
   0x1   :  { %v36_v0 = vld [vmem:[%s2616_s0 + $0x18] sm:$0xff]  ;;  %v2104_v1 = vld [vmem:[%s2616_s0 + $0x20] sm:$0xff]  ;;  %v2116_v4 = vld [vmem:[%s2616_s0 + $0x8] sm:$0xff]  ;;  %s2038_s21 = smov 125   ;;  %s2039_s22 = smov 123   ;;  %vm1049_vm4 = vcmask 1047768  }
   0x2   :  { %v1938_v2 = vpack.i.bf16 %v2104_v1, %v36_v0  ;;  %v2110_v3 = vld [vmem:[%s2616_s0] sm:$0xff]  ;;  %v35_v5 = vld [vmem:[%s2616_s0 + $0x10] sm:$0xff]  ;;  %s2036_s0 = smov 89   ;;  %v92_v35 = vpack.c.bf16 %v36_v0, %v36_v0  ;;  %v93_v57 = vpack.c.bf16 %v2104_v1, %v2104_v1  ;;  %s2040_s23 = smov 127   ;;  %v90_v63 = vpack.c.bf16 %v2116_v4, %v2116_v4 }
   0x3   :  { %39 = vrot.lane.b32.xlu1 %v2110_v3, %s2035_s15  ;;  %v1943_v6 = vpack.i.bf16 %v35_v5, %v2116_v4  ;;  %v91_v36 = vpack.c.bf16 %v35_v5, %v35_v5  ;;  %v89_v61 = vpack.c.bf16 %v2110_v3, %v2110_v3  ;;  %s2043_s16 = smov 122   ;;  %s2044_s17 = smov 124   ;;  %vm1486_vm12 = vcmask 220160  }
   0x4   :  { %1939 = vrot.lane.b32.xlu0 %v1938_v2, %s2035_s15  ;;  %v154_v38 = vunpack.c.l.b16 %v92_v35  ;;  %v155_v59 = vunpack.c.l.b16 %v93_v57  ;;  %v1884_v35 = vld [vmem:[%s2618_s1 + $0x74] sm:$0xff]  ;;  %vm1513_vm13 = vcmask 261120   ;;  %vm1537_vm14 = vcmask 3072  }
   0x5   :  { %v153_v37 = vunpack.c.l.b16 %v91_v36  ;;  %v529_v36 = vld [vmem:[%s2617_s2 + $0x18] sm:$0xff] }
   0x7   :  { %v162_v39 = vpack.c.b16 %v154_v38, %v153_v37  ;;  %v528_v37 = vld [vmem:[%s2617_s2 + $0x10] sm:$0xff]  ;;  %v1872_v38 = vld [vmem:[%s2618_s1 + $0x8] sm:$0xff] }
   0xc   :  { %1944 = vrot.lane.b32.xlu0 %v1943_v6, %s2035_s15 }
  0x75   :  { %v40_v19 = vpop.permute.xlu1 %39 }
  0x76   :  { %v1940_v7 = vpop.permute.xlu0 %1939  ;;  %v41_v20 = vsel %vm38_vm0, %v40_v19, %v2110_v3 }
  0x77   :  { %v1942_v8 = vunpack.i.h.bf16 %v1940_v7  ;;  %v1941_v9 = vunpack.i.l.bf16 %v1940_v7 }
  0x79   :  { %v50_v10 = vsel %vm38_vm0, %v1941_v9, %v36_v0  ;;  %v53_v11 = vsel %vm38_vm0, %v1942_v8, %v2104_v1 }
  0x7a   :  { %v1948_v12 = vpack.i.bf16 %v53_v11, %v50_v10 }
  0x7c   :  { %1949 = vrot.lane.b32.xlu1 %v1948_v12, %s2035_s15 }
  0x7e   :  { %v1945_v13 = vpop.permute.xlu0 %1944 }
  0x7f   :  { %v1947_v14 = vunpack.i.h.bf16 %v1945_v13  ;;  %v1946_v15 = vunpack.i.l.bf16 %v1945_v13  ;;  %v2041_v13 = vmov 0  }
  0x80   :  { %1970 = vset.pattern.permute.xlu1 %v2041_v13  ;;  %1968 = vset.pattern.permute.xlu2 %v2041_v13 }
  0x81   :  { %v44_v16 = vsel %vm38_vm0, %v1946_v15, %v2116_v4  ;;  %v47_v17 = vsel %vm38_vm0, %v1947_v14, %v35_v5  ;;  %1969 = vset.pattern.permute.xlu0 %v2041_v13  ;;  %v533_v14 = vld [vmem:[%s2617_s2 + $0x38] sm:$0xff] }
  0x82   :  { %v1953_v18 = vpack.i.bf16 %v47_v17, %v44_v16 }
  0x84   :  { %1954 = vrot.lane.b32.xlu2 %v1953_v18, %s2035_s15  ;;  %v531_v18 = vld [vmem:[%s2617_s2 + $0x28] sm:$0xff] }
  0x8c   :  { %54 = vrot.lane.b32.xlu2 %v41_v20, %s2035_s15  ;;  %v1879_v20 = vld [vmem:[%s2618_s1 + $0x48] sm:$0xff] }
  0xde   :  { %v1955_v21 = vpop.permute.xlu2 %1954 }
  0xdf   :  { %v1957_v22 = vunpack.i.h.bf16 %v1955_v21  ;;  %v1956_v23 = vunpack.i.l.bf16 %v1955_v21 }
  0xe1   :  { %v65_v24 = vsel %vm38_vm0, %v1956_v23, %v2116_v4  ;;  %v66_v25 = vsel %vm38_vm0, %v1957_v22, %v35_v5  ;;  %v526_v22 = vld [vmem:[%s2617_s2] sm:$0xff] }
  0xe2   :  { %v1963_v26 = vpack.i.bf16 %v66_v25, %v65_v24 }
  0xe4   :  { %1964 = vrot.lane.b32.xlu1 %v1963_v26, %s2036_s0  ;;  %v1883_v26 = vld [vmem:[%s2618_s1 + $0x6c] sm:$0xff] }
  0xe6   :  { %v55_v27 = vpop.permute.xlu2 %54 }
  0xe7   :  { %v64_v28 = vsel %vm38_vm0, %v55_v27, %v2110_v3  ;;  %v534_v27 = vld [vmem:[%s2617_s2 + $0x40] sm:$0xf] }
  0xe8   :  { %74 = vrot.lane.b32.xlu2 %v64_v28, %s2036_s0 }
  0xec   :  { %456 = vrot.lane.b32.xlu1 %v162_v39, %s2037_s20 }
  0xee   :  { %v1950_v29 = vpop.permute.xlu1 %1949 }
  0xef   :  { %v1952_v30 = vunpack.i.h.bf16 %v1950_v29  ;;  %v1951_v31 = vunpack.i.l.bf16 %v1950_v29  ;;  %v1871_v29 = vld [vmem:[%s2618_s1] sm:$0xff] }
  0xf0   :  { %168 = vrot.lane.b32.xlu2 %v162_v39, %s2038_s21 }
  0xf1   :  { %v67_v32 = vsel %vm38_vm0, %v1951_v31, %v36_v0  ;;  %v68_v33 = vsel %vm38_vm0, %v1952_v30, %v2104_v1  ;;  %v151_v0 = vunpack.c.l.b16 %v89_v61  ;;  %v152_v1 = vunpack.c.l.b16 %v90_v63  ;;  %v1880_v30 = vld [vmem:[%s2618_s1 + $0x50] sm:$0xff] }
  0xf2   :  { %v1958_v34 = vpack.i.bf16 %v68_v33, %v67_v32  ;;  %v1875_v32 = vld [vmem:[%s2618_s1 + $0x24] sm:$0xff]  ;;  %v532_v33 = vld [vmem:[%s2617_s2 + $0x30] sm:$0xff] }
  0xf3   :  { %v161_v2 = vpack.c.b16 %v152_v1, %v151_v0 }
  0xf4   :  { %1959 = vrot.lane.b32.xlu0 %v1958_v34, %s2036_s0  ;;  %v530_v34 = vld [vmem:[%s2617_s2 + $0x20] sm:$0xff] }
  0xfc   :  { %351 = vrot.lane.b32.xlu0 %v162_v39, %s2039_s22 }
 0x142   :  { %v75_v55 = vpop.permute.xlu2 %74 }
 0x143   :  { %v94_v58 = vpack.c.bf16 %v75_v55, %v75_v55  ;;  %v107_v55 = vld [vmem:[%s2618_s1 + $0x20] sm:$0x3] }
 0x144   :  { %v247_v57 = vunpack.c.l.b16 %v107_v55 }
 0x145   :  { %v156_v60 = vunpack.c.l.b16 %v94_v58 }
 0x147   :  { %v163_v62 = vpack.c.b16 %v156_v60, %v155_v59  ;;  %v252_v59 = vpack.c.b16 %v247_v57, %v247_v57 }
 0x14a   :  { %v169_v3 = vpop.permute.xlu2 %168 }
 0x156   :  { %v1965_v40 = vpop.permute.xlu1 %1964 }
 0x157   :  { %v1967_v44 = vunpack.i.h.bf16 %v1965_v40  ;;  %v1966_v45 = vunpack.i.l.bf16 %v1965_v40  ;;  %v1876_v40 = vld [vmem:[%s2618_s1 + $0x2c] sm:$0xff] }
 0x159   :  { %v96_v50 = vpack.c.bf16 %v1967_v44, %v1967_v44  ;;  %v95_v51 = vpack.c.bf16 %v1966_v45, %v1966_v45  ;;  %v1882_v44 = vld [vmem:[%s2618_s1 + $0x60] sm:$0xff]  ;;  %v1877_v45 = vld [vmem:[%s2618_s1 + $0x34] sm:$0xff] }
 0x15b   :  { %v158_v53 = vunpack.c.l.b16 %v96_v50  ;;  %v157_v54 = vunpack.c.l.b16 %v95_v51  ;;  %v1878_v51 = vld [vmem:[%s2618_s1 + $0x3c] sm:$0xff] }
 0x15d   :  { %v164_v56 = vpack.c.b16 %v158_v53, %v157_v54 }
 0x15e   :  { %v457_v5 = vpop.permute.xlu1 %456 }
 0x166   :  { %v1960_v41 = vpop.permute.xlu0 %1959 }
 0x167   :  { %v1962_v42 = vunpack.i.h.bf16 %v1960_v41  ;;  %v1961_v43 = vunpack.i.l.bf16 %v1960_v41  ;;  %v527_v41 = vld [vmem:[%s2617_s2 + $0x8] sm:$0xff] }
 0x169   :  { %v98_v46 = vpack.c.bf16 %v1962_v42, %v1962_v42  ;;  %v97_v47 = vpack.c.bf16 %v1961_v43, %v1961_v43  ;;  %v1885_v42 = vld [vmem:[%s2618_s1 + $0x7c] sm:$0xff]  ;;  %v1873_v43 = vld [vmem:[%s2618_s1 + $0x10] sm:$0xff] }
 0x16b   :  { %v160_v48 = vunpack.c.l.b16 %v98_v46  ;;  %v159_v49 = vunpack.c.l.b16 %v97_v47  ;;  %v1886_v46 = vld [vmem:[%s2618_s1 + $0x84] sm:$0xff] }
 0x16c   :  { %v1634_v47 = vld [vmem:[%s2618_s1 + $0x68] sm:$0x3] }
 0x16d   :  { %v165_v52 = vpack.c.b16 %v160_v48, %v159_v49  ;;  %v343_v48 = vunpack.c.l.b16 %v1634_v47  ;;  %v1874_v49 = vld [vmem:[%s2618_s1 + $0x18] sm:$0xff] }
 0x16e   :  { %v352_v6 = vpop.permute.xlu0 %351 }
 0x16f   :  { %174 = vrot.lane.b32.xlu2 %v165_v52, %s2038_s21  ;;  %462 = vrot.lane.b32.xlu1 %v165_v52, %s2037_s20  ;;  %v348_v50 = vpack.c.b16 %v343_v48, %v343_v48 }
 0x170   :  { %357 = vrot.lane.b32.xlu0 %v165_v52, %s2039_s22 }
 0x177   :  { %460 = vrot.lane.b32.xlu2 %v164_v56, %s2037_s20  ;;  %355 = vrot.lane.b32.xlu1 %v164_v56, %s2039_s22 }
 0x178   :  { %261 = vrot.lane.b32.xlu0 %v165_v52, %s2040_s23  ;;  %v1664_v52 = vld [vmem:[%s2618_s1 + $0x8c] sm:$0x3] }
 0x179   :  { %v448_v53 = vunpack.c.l.b16 %v1664_v52 }
 0x17b   :  { %v453_v54 = vpack.c.b16 %v448_v53, %v448_v53 }
 0x17f   :  { %353 = vrot.lane.b32.xlu2 %v163_v62, %s2039_s22  ;;  %259 = vrot.lane.b32.xlu1 %v164_v56, %s2040_s23 }
 0x180   :  { %172 = vrot.lane.b32.xlu0 %v164_v56, %s2038_s21  ;;  %v1583_v56 = vld [vmem:[%s2618_s1 + $0x44] sm:$0x3] }
 0x181   :  { %v135_v58 = vunpack.c.l.b16 %v1583_v56 }
 0x183   :  { %v140_v60 = vpack.c.b16 %v135_v58, %v135_v58 }
 0x187   :  { %257 = vrot.lane.b32.xlu2 %v163_v62, %s2040_s23  ;;  %349 = vrot.lane.b32.xlu1 %v161_v2, %s2039_s22 }
 0x188   :  { %458 = vrot.lane.b32.xlu0 %v163_v62, %s2037_s20 }
 0x18f   :  { %170 = vrot.lane.b32.xlu1 %v163_v62, %s2038_s21  ;;  %454 = vrot.lane.b32.xlu2 %v161_v2, %s2037_s20 }
 0x190   :  { %255 = vrot.lane.b32.xlu0 %v162_v39, %s2040_s23  ;;  %v1881_v39 = vld [vmem:[%s2618_s1 + $0x58] sm:$0xff]  ;;  %s2042_s1 = smov 126  }
 0x197   :  { %253 = vrot.lane.b32.xlu1 %v161_v2, %s2040_s23  ;;  %577 = vperm.xlu2 %1968, %v534_v27  }
 0x198   :  { %166 = vrot.lane.b32.xlu0 %v161_v2, %s2038_s21 }
 0x19f   :  { %572 = vperm.xlu1 %1970, %v533_v14   ;;  %557 = vperm.xlu2 %1968, %v530_v34  }
 0x1a0   :  { %567 = vperm.xlu0 %1969, %v532_v33  }
 0x1a7   :  { %562 = vperm.xlu1 %1970, %v531_v18   ;;  %547 = vperm.xlu2 %1968, %v528_v37  }
 0x1a8   :  { %552 = vperm.xlu0 %1969, %v529_v36  }
 0x1af   :  { %537 = vperm.xlu1 %1970, %v526_v22   ;;  %542 = vperm.xlu2 %1968, %v527_v41  }
 0x1c9   :  { %v175_v4 = vpop.permute.xlu2 %174 }
 0x1ca   :  { %200 = vmatpush.bf16.msra.mxu0 %v175_v4 }
 0x1d1   :  { %v461_v7 = vpop.permute.xlu2 %460 }
 0x1d9   :  { %v354_v12 = vpop.permute.xlu2 %353 }
 0x1e1   :  { %v463_v8 = vpop.permute.xlu1 %462  ;;  %v258_v17 = vpop.permute.xlu2 %257 }
 0x1e2   :  { %v358_v9 = vpop.permute.xlu0 %357  ;;  %487 = vmatpush.bf16.msra.mxu3 %v463_v8 }
 0x1e3   :  { %382 = vmatpush.bf16.msra.mxu2 %v358_v9 }
 0x1e6   :  { %488 = vmatpush.bf16.msra.mxu3 %v461_v7 }
 0x1e9   :  { %v356_v10 = vpop.permute.xlu1 %355  ;;  %v455_v23 = vpop.permute.xlu2 %454 }
 0x1ea   :  { %v262_v11 = vpop.permute.xlu0 %261  ;;  %383 = vmatpush.bf16.msra.mxu2 %v356_v10 }
 0x1eb   :  { %286 = vmatpush.bf16.msra.mxu1 %v262_v11 }
 0x1ee   :  { %384 = vmatpush.bf16.msra.mxu2 %v354_v12 }
 0x1f1   :  { %v260_v15 = vpop.permute.xlu1 %259  ;;  %v2266_v61 = vpop.permute.xlu2 %577 }
 0x1f2   :  { %v173_v16 = vpop.permute.xlu0 %172  ;;  %287 = vmatpush.bf16.msra.mxu1 %v260_v15  ;;  %385 = vmatpush.bf16.msra.mxu2 %v352_v6 }
 0x1f3   :  { %201 = vmatpush.bf16.msra.mxu0 %v173_v16 }
 0x1f6   :  { %288 = vmatpush.bf16.msra.mxu1 %v258_v17 }
 0x1f9   :  { %v350_v19 = vpop.permute.xlu1 %349  ;;  %v2270_v0 = vpop.permute.xlu2 %557 }
 0x1fa   :  { %v459_v21 = vpop.permute.xlu0 %458  ;;  %386 = vmatpush.bf16.msra.mxu2 %v350_v19 }
 0x1fb   :  { %489 = vmatpush.bf16.msra.mxu3 %v459_v21 }
 0x1fd   :  { %1651 = vmatmul.msk.bf16.vlgmr.msra.gmra.mxu2 %vm181_vm1, %v1879_v20 }
 0x1ff   :  { %490 = vmatpush.bf16.msra.mxu3 %v457_v5 }
 0x201   :  { %v171_v24 = vpop.permute.xlu1 %170  ;;  %v548_v7 = vpop.permute.xlu2 %547 }
 0x202   :  { %v256_v25 = vpop.permute.xlu0 %255  ;;  %202 = vmatpush.bf16.msra.mxu0 %v171_v24 }
 0x203   :  { %289 = vmatpush.bf16.msra.mxu1 %v256_v25  ;;  %491 = vmatpush.bf16.msra.mxu3 %v455_v23 }
 0x206   :  { %1681 = vmatmul.msk.bf16.vlgmr.msra.gmra.mxu3 %vm181_vm1, %v1883_v26  ;;  %203 = vmatpush.bf16.msra.mxu0 %v169_v3 }
 0x209   :  { %v254_v28 = vpop.permute.xlu1 %253  ;;  %v543_v18 = vpop.permute.xlu2 %542 }
 0x20a   :  { %v167_v31 = vpop.permute.xlu0 %166  ;;  %290 = vmatpush.bf16.msra.mxu1 %v254_v28 }
 0x20b   :  { %204 = vmatpush.bf16.msra.mxu0 %v167_v31 }
 0x20d   :  { %1621 = vmatmul.msk.bf16.vlgmr.msra.gmra.mxu1 %vm181_vm1, %v1871_v29  ;;  %1652 = vmatmul.msk.bf16.gmra.mxu2 %vm181_vm1, %v1880_v30 }
 0x20e   :  { %1600 = vmatmul.msk.bf16.vlgmr.msra.gmra.mxu0 %vm181_vm1, %v1875_v32 }
 0x211   :  { %v2268_v62 = vpop.permute.xlu1 %572 }
 0x212   :  { %v568_v29 = vpop.permute.xlu0 %567 }
 0x216   :  { %1682 = vmatmul.msk.bf16.gmra.mxu3 %vm181_vm1, %v1884_v35 }
 0x219   :  { %v2272_v1 = vpop.permute.xlu1 %562 }
 0x21d   :  { %1622 = vmatmul.msk.bf16.gmra.mxu1 %vm181_vm1, %v1872_v38  ;;  %1653 = vmatmul.msk.bf16.gmra.mxu2 %vm181_vm1, %v1881_v39 }
 0x21e   :  { %1601 = vmatmul.msk.bf16.gmra.mxu0 %vm181_vm1, %v1876_v40 }
 0x221   :  { %v538_v12 = vpop.permute.xlu1 %537 }
 0x226   :  { %1683 = vmatmul.msk.bf16.gmra.mxu3 %vm181_vm1, %v1885_v42 }
 0x22d   :  { %1623 = vmatmul.msk.bf16.gmra.mxu1 %vm181_vm1, %v1873_v43  ;;  %1654 = vmatmul.msk.bf16.gmra.mxu2 %vm181_vm1, %v1882_v44  ;;  %v553_v43 = vpop.permute.xlu0 %552 }
 0x22e   :  { %1602 = vmatmul.msk.bf16.gmra.mxu0 %vm181_vm1, %v1877_v45 }
 0x236   :  { %1684 = vmatmul.msk.bf16.gmra.mxu3 %vm181_vm1, %v1886_v46 }
 0x23d   :  { %1624 = vmatmul.msk.bf16.gmra.mxu1 %vm181_vm1, %v1874_v49  ;;  %1655 = vmatmul.msk.bf16.gmra.mxu2 %vm181_vm1, %v348_v50 }
 0x23e   :  { %1603 = vmatmul.msk.bf16.gmra.mxu0 %vm181_vm1, %v1878_v51 }
 0x246   :  { %1685 = vmatmul.msk.bf16.gmra.mxu3 %vm181_vm1, %v453_v54 }
 0x24d   :  { %1625 = vmatmul.msk.bf16.gmra.mxu1 %vm181_vm1, %v252_v59 }
 0x24e   :  { %1604 = vmatmul.msk.bf16.gmra.mxu0 %vm181_vm1, %v140_v60 }
 0x280   :  { %v388_v63 = vpop.f32.mrf.mxu2 }
 0x288   :  { %v390_v2 = vpop.f32.mrf.mxu2 }
 0x289   :  { %v493_v3 = vpop.f32.mrf.mxu3 }
 0x28a   :  { %v292_v4 = vpop.f32.mrf.mxu1 }
 0x28b   :  { %v206_v5 = vpop.f32.mrf.mxu0 }
 0x28c   :  { %v293_v6 = vadd.f32 %v292_v4, %v206_v5 }
 0x28e   :  { %v412_v8 = vadd.f32 %v388_v63, %v293_v6 }
 0x290   :  { %v517_v9 = vadd.f32 %v493_v3, %v412_v8  ;;  %v393_v10 = vpop.f32.mrf.mxu2 }
 0x291   :  { %v495_v11 = vpop.f32.mrf.mxu3 }
 0x292   :  { %v294_v13 = vpop.f32.mrf.mxu1  ;;  %v580_v15 = vadd.f32 %v538_v12, %v517_v9 }
 0x293   :  { %v208_v14 = vpop.f32.mrf.mxu0 }
 0x294   :  { %v295_v16 = vadd.f32 %v294_v13, %v208_v14  ;;  %v589_v19 = vmax.f32 %v580_v15, 0.0 }
 0x296   :  { %v413_v17 = vadd.f32 %v390_v2, %v295_v16  ;;  %v598_v26 = vpack.c.bf16 %v589_v19, %v589_v19 }
 0x298   :  { %v518_v20 = vadd.f32 %v495_v11, %v413_v17  ;;  %v395_v21 = vpop.f32.mrf.mxu2  ;;  %v653_v32 = vunpack.c.l.b16 %v598_v26 }
 0x299   :  { %v498_v22 = vpop.f32.mrf.mxu3 }
 0x29a   :  { %v581_v23 = vadd.f32 %v543_v18, %v518_v20  ;;  %v297_v24 = vpop.f32.mrf.mxu1 }
 0x29b   :  { %v211_v25 = vpop.f32.mrf.mxu0 }
 0x29c   :  { %v590_v27 = vmax.f32 %v581_v23, 0.0  ;;  %v298_v28 = vadd.f32 %v297_v24, %v211_v25 }
 0x29e   :  { %v599_v30 = vpack.c.bf16 %v590_v27, %v590_v27  ;;  %v414_v31 = vadd.f32 %v393_v10, %v298_v28 }
 0x2a0   :  { %v654_v33 = vunpack.c.l.b16 %v599_v30  ;;  %v519_v34 = vadd.f32 %v498_v22, %v414_v31  ;;  %v398_v35 = vpop.f32.mrf.mxu2 }
 0x2a1   :  { %v500_v36 = vpop.f32.mrf.mxu3 }
 0x2a2   :  { %v2274_v37 = vpack.c.b16 %v654_v33, %v653_v32  ;;  %v299_v38 = vpop.f32.mrf.mxu1  ;;  %v582_v40 = vadd.f32 %v548_v7, %v519_v34 }
 0x2a3   :  { %v213_v39 = vpop.f32.mrf.mxu0 }
 0x2a4   :  { %v300_v41 = vadd.f32 %v299_v38, %v213_v39  ;;  %v591_v45 = vmax.f32 %v582_v40, 0.0 }
 0x2a6   :  { %v415_v42 = vadd.f32 %v395_v21, %v300_v41  ;;  %v600_v52 = vpack.c.bf16 %v591_v45, %v591_v45 }
 0x2a8   :  { %v520_v44 = vadd.f32 %v500_v36, %v415_v42  ;;  %v400_v46 = vpop.f32.mrf.mxu2  ;;  %v655_v54 = vunpack.c.l.b16 %v600_v52  ;;  %v989_v52 = vld [vmem:[%s2619_s4 + $0x20] sm:$0xff] }
 0x2a9   :  { %v503_v47 = vpop.f32.mrf.mxu3 }
 0x2aa   :  { %v583_v48 = vadd.f32 %v553_v43, %v520_v44  ;;  %v302_v49 = vpop.f32.mrf.mxu1 }
 0x2ab   :  { %v216_v50 = vpop.f32.mrf.mxu0 }
 0x2ac   :  { %v592_v51 = vmax.f32 %v583_v48, 0.0  ;;  %v303_v16 = vadd.f32 %v302_v49, %v216_v50 }
 0x2ae   :  { %v601_v53 = vpack.c.bf16 %v592_v51, %v592_v51  ;;  %v416_v25 = vadd.f32 %v398_v35, %v303_v16 }
 0x2b0   :  { %v656_v55 = vunpack.c.l.b16 %v601_v53  ;;  %v403_v56 = vpop.f32.mrf.mxu2  ;;  %v521_v32 = vadd.f32 %v503_v47, %v416_v25  ;;  %v992_v53 = vld [vmem:[%s2619_s4 + $0x38] sm:$0xff] }
 0x2b1   :  { %v505_v57 = vpop.f32.mrf.mxu3  ;;  %v1890_v25 = vld [vmem:[%s2620_s3 + $0x18] sm:$0xff] }
 0x2b2   :  { %v2276_v58 = vpack.c.b16 %v656_v55, %v655_v54  ;;  %v304_v59 = vpop.f32.mrf.mxu1  ;;  %v584_v35 = vadd.f32 %v2270_v0, %v521_v32  ;;  %v991_v54 = vld [vmem:[%s2619_s4 + $0x30] sm:$0xff]  ;;  %v988_v55 = vld [vmem:[%s2619_s4 + $0x18] sm:$0xff] }
 0x2b3   :  { %v218_v60 = vpop.f32.mrf.mxu0  ;;  %v1898_v32 = vld [vmem:[%s2620_s3 + $0x58] sm:$0xff] }
 0x2b4   :  { %v305_v14 = vadd.f32 %v304_v59, %v218_v60 }
 0x2b6   :  { %v417_v21 = vadd.f32 %v400_v46, %v305_v14 }
 0x2b8   :  { %v405_v63 = vpop.f32.mrf.mxu2  ;;  %v522_v30 = vadd.f32 %v505_v57, %v417_v21  ;;  %v986_v57 = vld [vmem:[%s2619_s4 + $0x8] sm:$0xff]  ;;  %v1899_v21 = vld [vmem:[%s2620_s3 + $0x60] sm:$0xff] }
 0x2b9   :  { %v508_v2 = vpop.f32.mrf.mxu3 }
 0x2ba   :  { %v307_v3 = vpop.f32.mrf.mxu1  ;;  %v585_v39 = vadd.f32 %v2272_v1, %v522_v30  ;;  %v593_v1 = vmax.f32 %v584_v35, 0.0  ;;  %v1901_v30 = vld [vmem:[%s2620_s3 + $0x70] sm:$0xff] }
 0x2bb   :  { %v221_v4 = vpop.f32.mrf.mxu0 }
 0x2bc   :  { %v308_v5 = vadd.f32 %v307_v3, %v221_v4  ;;  %v594_v44 = vmax.f32 %v585_v39, 0.0  ;;  %v602_v48 = vpack.c.bf16 %v593_v1, %v593_v1  ;;  %v1887_v3 = vld [vmem:[%s2620_s3] sm:$0xff] }
 0x2be   :  { %v418_v6 = vadd.f32 %v403_v56, %v308_v5  ;;  %v657_v50 = vunpack.c.l.b16 %v602_v48  ;;  %v990_v56 = vld [vmem:[%s2619_s4 + $0x28] sm:$0xff] }
 0x2c0   :  { %v523_v7 = vadd.f32 %v508_v2, %v418_v6  ;;  %v408_v8 = vpop.f32.mrf.mxu2 }
 0x2c1   :  { %v510_v9 = vpop.f32.mrf.mxu3 }
 0x2c2   :  { %v309_v10 = vpop.f32.mrf.mxu1  ;;  %v586_v12 = vadd.f32 %v568_v29, %v523_v7 }
 0x2c3   :  { %v223_v11 = vpop.f32.mrf.mxu0 }
 0x2c4   :  { %v310_v13 = vadd.f32 %v309_v10, %v223_v11  ;;  %v595_v17 = vmax.f32 %v586_v12, 0.0 }
 0x2c6   :  { %v419_v15 = vadd.f32 %v405_v63, %v310_v13  ;;  %v604_v26 = vpack.c.bf16 %v595_v17, %v595_v17  ;;  %v1888_v13 = vld [vmem:[%s2620_s3 + $0x8] sm:$0xff] }
 0x2c7   :  { %v1892_v17 = vld [vmem:[%s2620_s3 + $0x28] sm:$0xff] }
 0x2c8   :  { %v524_v18 = vadd.f32 %v510_v9, %v419_v15  ;;  %v410_v19 = vpop.f32.mrf.mxu2  ;;  %v659_v33 = vunpack.c.l.b16 %v604_v26  ;;  %v1891_v9 = vld [vmem:[%s2620_s3 + $0x20] sm:$0xff]  ;;  %v1900_v26 = vld [vmem:[%s2620_s3 + $0x68] sm:$0xff] }
 0x2c9   :  { %v513_v20 = vpop.f32.mrf.mxu3  ;;  %v1889_v19 = vld [vmem:[%s2620_s3 + $0x10] sm:$0xff] }
 0x2ca   :  { %v587_v22 = vadd.f32 %v2268_v62, %v524_v18  ;;  %v312_v23 = vpop.f32.mrf.mxu1 }
 0x2cb   :  { %v226_v24 = vpop.f32.mrf.mxu0 }
 0x2cc   :  { %v596_v27 = vmax.f32 %v587_v22, 0.0  ;;  %v313_v28 = vadd.f32 %v312_v23, %v226_v24  ;;  %v1895_v23 = vld [vmem:[%s2620_s3 + $0x40] sm:$0xff]  ;;  %v1893_v24 = vld [vmem:[%s2620_s3 + $0x30] sm:$0xff] }
 0x2ce   :  { %v605_v31 = vpack.c.bf16 %v596_v27, %v596_v27  ;;  %v420_v29 = vadd.f32 %v408_v8, %v313_v28  ;;  %v1896_v27 = vld [vmem:[%s2620_s3 + $0x48] sm:$0xff]  ;;  %v1894_v28 = vld [vmem:[%s2620_s3 + $0x38] sm:$0xff] }
 0x2d0   :  { %v660_v34 = vunpack.c.l.b16 %v605_v31  ;;  %v525_v36 = vadd.f32 %v513_v20, %v420_v29  ;;  %v1897_v31 = vld [vmem:[%s2620_s3 + $0x50] sm:$0xff]  ;;  %v1902_v29 = vld [vmem:[%s2620_s3 + $0x78] sm:$0xff]  ;;  %s2045_s3 = smov 27  }
 0x2d1   :  { %v515_v38 = vpop.f32.mrf.mxu3 }
 0x2d2   :  { %v588_v40 = vadd.f32 %v2266_v61, %v525_v36  ;;  %v314_v41 = vpop.f32.mrf.mxu1  ;;  %v665_v62 = vpack.c.b16 %v660_v34, %v659_v33  ;;  %v603_v61 = vpack.c.bf16 %v594_v44, %v594_v44 }
 0x2d3   :  { %v228_v42 = vpop.f32.mrf.mxu0 }
 0x2d4   :  { %v597_v43 = vmax.f32 %v588_v40, 0.0  ;;  %673 = vrot.lane.b32.xlu2 %v665_v62, %s2042_s1  ;;  %925 = vrot.lane.b32.xlu1 %v665_v62, %s2043_s16  ;;  %v658_v49 = vunpack.c.l.b16 %v603_v61 }
 0x2d5   :  { %830 = vrot.lane.b32.xlu0 %v665_v62, %s2044_s17 }
 0x2d6   :  { %v606_v45 = vpack.c.bf16 %v597_v43, %v597_v43  ;;  %v664_v51 = vpack.c.b16 %v658_v49, %v657_v50 }
 0x2d8   :  { %v661_v46 = vunpack.c.l.b16 %v606_v45 }
 0x2da   :  { %v666_v47 = vpack.c.b16 %v661_v46, %v661_v46 }
 0x2dc   :  { %675 = vrot.lane.b32.xlu2 %v666_v47, %s2042_s1  ;;  %927 = vrot.lane.b32.xlu1 %v666_v47, %s2043_s16  ;;  %v764_v0 = vsel %vm694_vm2, %v666_v47, 0 }
 0x2dd   :  { %832 = vrot.lane.b32.xlu0 %v666_v47, %s2044_s17  ;;  %769 = vmatpush.bf16.msrb.mxu1 %v764_v0 }
 0x2e1   :  { %770 = vmatpush.bf16.msrb.mxu1 %v665_v62 }
 0x2e4   :  { %671 = vrot.lane.b32.xlu2 %v664_v51, %s2042_s1  ;;  %923 = vrot.lane.b32.xlu1 %v664_v51, %s2043_s16 }
 0x2e5   :  { %828 = vrot.lane.b32.xlu0 %v664_v51, %s2044_s17  ;;  %771 = vmatpush.bf16.msrb.mxu1 %v664_v51 }
 0x2e9   :  { %772 = vmatpush.bf16.msrb.mxu1 %v2276_v58 }
 0x2ec   :  { %669 = vrot.lane.b32.xlu2 %v2276_v58, %s2042_s1  ;;  %921 = vrot.lane.b32.xlu1 %v2276_v58, %s2043_s16 }
 0x2ed   :  { %826 = vrot.lane.b32.xlu0 %v2276_v58, %s2044_s17  ;;  %773 = vmatpush.bf16.msrb.mxu1 %v2274_v37  ;;  %v985_v58 = vld [vmem:[%s2619_s4] sm:$0xff] }
 0x2f0   :  { %1730 = vmatmul.msk.bf16.vlgmr.msrb.gmra.mxu1 %vm681_vm3, %v1887_v3 }
 0x2f4   :  { %667 = vrot.lane.b32.xlu2 %v2274_v37, %s2042_s1  ;;  %919 = vrot.lane.b32.xlu1 %v2274_v37, %s2043_s16  ;;  %s2046_s16 = smov 25  }
 0x2f5   :  { %824 = vrot.lane.b32.xlu0 %v2274_v37, %s2044_s17  ;;  %v987_v37 = vld [vmem:[%s2619_s4 + $0x10] sm:$0xff]  ;;  %s2047_s17 = smov 103  }
 0x2fc   :  { %1015 = vperm.xlu2 %1968, %v989_v52   ;;  %1030 = vperm.xlu1 %1970, %v992_v53  }
 0x2fd   :  { %1025 = vperm.xlu0 %1969, %v991_v54  }
 0x300   :  { %1731 = vmatmul.msk.bf16.gmra.mxu1 %vm681_vm3, %v1888_v13 }
 0x304   :  { %1010 = vperm.xlu2 %1968, %v988_v55   ;;  %1005 = vperm.xlu1 %1970, %v987_v37  }
 0x305   :  { %1020 = vperm.xlu0 %1969, %v990_v56  }
 0x30c   :  { %1000 = vperm.xlu1 %1970, %v986_v57  }
 0x30d   :  { %995 = vperm.xlu0 %1969, %v985_v58  }
 0x310   :  { %1732 = vmatmul.msk.bf16.gmra.mxu1 %vm681_vm3, %v1889_v19 }
 0x320   :  { %1733 = vmatmul.msk.bf16.gmra.mxu1 %vm681_vm3, %v1890_v25 }
 0x32e   :  { %v674_v59 = vpop.permute.xlu2 %673 }
 0x336   :  { %v676_v60 = vpop.permute.xlu2 %675 }
 0x337   :  { %v696_v63 = vsel %vm694_vm2, %v676_v60, 0 }
 0x338   :  { %701 = vmatpush.bf16.msrb.mxu0 %v696_v63 }
 0x33c   :  { %702 = vmatpush.bf16.msrb.mxu0 %v674_v59 }
 0x33e   :  { %v672_v2 = vpop.permute.xlu2 %671 }
 0x340   :  { %703 = vmatpush.bf16.msrb.mxu0 %v672_v2 }
 0x346   :  { %v670_v4 = vpop.permute.xlu2 %669  ;;  %v926_v5 = vpop.permute.xlu1 %925 }
 0x347   :  { %v831_v6 = vpop.permute.xlu0 %830  ;;  %704 = vmatpush.bf16.msrb.mxu0 %v670_v4 }
 0x34e   :  { %v668_v7 = vpop.permute.xlu2 %667  ;;  %v928_v8 = vpop.permute.xlu1 %927 }
 0x34f   :  { %v833_v10 = vpop.permute.xlu0 %832  ;;  %705 = vmatpush.bf16.msrb.mxu0 %v668_v7  ;;  %v946_v11 = vsel %vm694_vm2, %v928_v8, 0 }
 0x350   :  { %v851_v12 = vsel %vm694_vm2, %v833_v10, 0  ;;  %951 = vmatpush.bf16.msrb.mxu3 %v946_v11 }
 0x351   :  { %856 = vmatpush.bf16.msrb.mxu2 %v851_v12 }
 0x352   :  { %1710 = vmatmul.msk.bf16.vlgmr.msrb.gmra.mxu0 %vm681_vm3, %v1891_v9 }
 0x354   :  { %952 = vmatpush.bf16.msrb.mxu3 %v926_v5 }
 0x355   :  { %857 = vmatpush.bf16.msrb.mxu2 %v831_v6 }
 0x356   :  { %v924_v14 = vpop.permute.xlu1 %923  ;;  %v1016_v49 = vpop.permute.xlu2 %1015 }
 0x357   :  { %v829_v15 = vpop.permute.xlu0 %828 }
 0x358   :  { %953 = vmatpush.bf16.msrb.mxu3 %v924_v14 }
 0x359   :  { %858 = vmatpush.bf16.msrb.mxu2 %v829_v15 }
 0x35e   :  { %v922_v16 = vpop.permute.xlu1 %921  ;;  %v1011_v60 = vpop.permute.xlu2 %1010 }
 0x35f   :  { %v827_v18 = vpop.permute.xlu0 %826  ;;  %954 = vmatpush.bf16.msrb.mxu3 %v922_v16 }
 0x360   :  { %859 = vmatpush.bf16.msrb.mxu2 %v827_v18 }
 0x362   :  { %1711 = vmatmul.msk.bf16.gmra.mxu0 %vm681_vm3, %v1892_v17 }
 0x366   :  { %v920_v20 = vpop.permute.xlu1 %919 }
 0x367   :  { %v825_v22 = vpop.permute.xlu0 %824  ;;  %955 = vmatpush.bf16.msrb.mxu3 %v920_v20 }
 0x368   :  { %860 = vmatpush.bf16.msrb.mxu2 %v825_v22 }
 0x36a   :  { %1786 = vmatmul.msk.bf16.vlgmr.msrb.gmra.mxu3 %vm681_vm3, %v1899_v21 }
 0x36b   :  { %1758 = vmatmul.msk.bf16.vlgmr.msrb.gmra.mxu2 %vm681_vm3, %v1895_v23 }
 0x36d   :  { %v775_v34 = vpop.f32.mrf.mxu1 }
 0x36e   :  { %v1031_v48 = vpop.permute.xlu1 %1030 }
 0x36f   :  { %v1026_v10 = vpop.permute.xlu0 %1025 }
 0x372   :  { %1712 = vmatmul.msk.bf16.gmra.mxu0 %vm681_vm3, %v1893_v24 }
 0x375   :  { %v2397_v38 = vpop.f32.mrf.mxu1 }
 0x376   :  { %v1006_v57 = vpop.permute.xlu1 %1005 }
 0x377   :  { %v1021_v21 = vpop.permute.xlu0 %1020 }
 0x37a   :  { %1787 = vmatmul.msk.bf16.gmra.mxu3 %vm681_vm3, %v1900_v26 }
 0x37b   :  { %1759 = vmatmul.msk.bf16.gmra.mxu2 %vm681_vm3, %v1896_v27 }
 0x37d   :  { %v780_v42 = vpop.f32.mrf.mxu1 }
 0x382   :  { %1713 = vmatmul.msk.bf16.gmra.mxu0 %vm681_vm3, %v1894_v28 }
 0x385   :  { %v782_v1 = vpop.f32.mrf.mxu1 }
 0x38a   :  { %1788 = vmatmul.msk.bf16.gmra.mxu3 %vm681_vm3, %v1901_v30 }
 0x38b   :  { %1760 = vmatmul.msk.bf16.gmra.mxu2 %vm681_vm3, %v1897_v31 }
 0x38d   :  { %v785_v51 = vpop.f32.mrf.mxu1 }
 0x395   :  { %v787_v6 = vpop.f32.mrf.mxu1 }
 0x39a   :  { %1789 = vmatmul.msk.bf16.gmra.mxu3 %vm681_vm3, %v1902_v29 }
 0x39b   :  { %1761 = vmatmul.msk.bf16.gmra.mxu2 %vm681_vm3, %v1898_v32 }
 0x39d   :  { %v790_v18 = vpop.f32.mrf.mxu1 }
 0x3a5   :  { %v792_v29 = vpop.f32.mrf.mxu1 }
 0x3cf   :  { %v707_v33 = vpop.f32.mrf.mxu0 }
 0x3d0   :  { %v776_v36 = vadd.f32 %v775_v34, %v707_v33 }
 0x3d7   :  { %v2399_v39 = vpop.f32.mrf.mxu0 }
 0x3d8   :  { %v778_v32 = vadd.f32 %v2397_v38, %v2399_v39  ;;  %v996_v39 = vpop.permute.xlu0 %995 }
 0x3df   :  { %v712_v35 = vpop.f32.mrf.mxu0 }
 0x3e0   :  { %v781_v61 = vadd.f32 %v780_v42, %v712_v35 }
 0x3e7   :  { %v714_v46 = vpop.f32.mrf.mxu0 }
 0x3e8   :  { %v783_v54 = vadd.f32 %v782_v1, %v714_v46 }
 0x3ed   :  { %v957_v40 = vpop.f32.mrf.mxu3 }
 0x3ee   :  { %v862_v41 = vpop.f32.mrf.mxu2 }
 0x3ef   :  { %v882_v62 = vadd.f32 %v862_v41, %v776_v36  ;;  %v717_v52 = vpop.f32.mrf.mxu0 }
 0x3f0   :  { %v786_v4 = vadd.f32 %v785_v51, %v717_v52 }
 0x3f1   :  { %v2401_v43 = vadd.f32 %v957_v40, %v882_v62 }
 0x3f5   :  { %v2403_v44 = vpop.f32.mrf.mxu3 }
 0x3f6   :  { %v864_v45 = vpop.f32.mrf.mxu2 }
 0x3f7   :  { %v719_v8 = vpop.f32.mrf.mxu0  ;;  %v883_v40 = vadd.f32 %v864_v45, %v778_v32 }
 0x3f8   :  { %v788_v13 = vadd.f32 %v787_v6, %v719_v8 }
 0x3f9   :  { %v978_v1 = vadd.f32 %v2403_v44, %v883_v40 }
 0x3fd   :  { %v962_v47 = vpop.f32.mrf.mxu3 }
 0x3fe   :  { %v867_v0 = vpop.f32.mrf.mxu2 }
 0x3ff   :  { %v884_v50 = vadd.f32 %v867_v0, %v781_v61  ;;  %v722_v17 = vpop.f32.mrf.mxu0  ;;  %v1001_v0 = vpop.permute.xlu1 %1000 }
 0x400   :  { %v791_v25 = vadd.f32 %v790_v18, %v722_v17 }
 0x401   :  { %v979_v53 = vadd.f32 %v962_v47, %v884_v50  ;;  %v1033_v50 = vadd.f32 %v996_v39, %v2401_v43 }
 0x403   :  { %v1035_v58 = vadd.f32 %v1006_v57, %v979_v53  ;;  %v2432_v51 = vmax.f32 %v1033_v50, 0.0 }
 0x405   :  { %v964_v55 = vpop.f32.mrf.mxu3  ;;  %v2405_v2 = vmax.f32 %v1035_v58, 0.0 }
 0x406   :  { %v869_v37 = vpop.f32.mrf.mxu2 }
 0x407   :  { %v885_v56 = vadd.f32 %v869_v37, %v783_v54  ;;  %v724_v31 = vpop.f32.mrf.mxu0 }
 0x408   :  { %v793_v34 = vadd.f32 %v792_v29, %v724_v31 }
 0x409   :  { %v980_v59 = vadd.f32 %v964_v55, %v885_v56 }
 0x40b   :  { %v1036_v63 = vadd.f32 %v1011_v60, %v980_v59 }
 0x40d   :  { %v2407_v3 = vmax.f32 %v1036_v63, 0.0  ;;  %v967_v5 = vpop.f32.mrf.mxu3 }
 0x40e   :  { %v872_v7 = vpop.f32.mrf.mxu2 }
 0x40f   :  { %v1981_v9 = vpack.i.bf16 %v2407_v3, %v2405_v2  ;;  %v886_v11 = vadd.f32 %v872_v7, %v786_v4 }
 0x411   :  { %1982 = vrot.lane.b32.xlu1 %v1981_v9, %s2045_s3  ;;  %v981_v12 = vadd.f32 %v967_v5, %v886_v11 }
 0x413   :  { %v1037_v19 = vadd.f32 %v1016_v49, %v981_v12  ;;  %v1034_v49 = vadd.f32 %v1001_v0, %v978_v1 }
 0x415   :  { %v969_v14 = vpop.f32.mrf.mxu3  ;;  %v2412_v23 = vmax.f32 %v1037_v19, 0.0  ;;  %v2430_v45 = vmax.f32 %v1034_v49, 0.0 }
 0x416   :  { %v874_v15 = vpop.f32.mrf.mxu2 }
 0x417   :  { %v887_v16 = vadd.f32 %v874_v15, %v788_v13  ;;  %v2006_v44 = vpack.i.bf16 %v2430_v45, %v2432_v51 }
 0x419   :  { %v982_v20 = vadd.f32 %v969_v14, %v887_v16 }
 0x41b   :  { %v1038_v22 = vadd.f32 %v1021_v21, %v982_v20 }
 0x41d   :  { %v2414_v24 = vmax.f32 %v1038_v22, 0.0  ;;  %v972_v27 = vpop.f32.mrf.mxu3 }
 0x41e   :  { %v877_v26 = vpop.f32.mrf.mxu2 }
 0x41f   :  { %v1976_v28 = vpack.i.bf16 %v2414_v24, %v2412_v23  ;;  %v888_v30 = vadd.f32 %v877_v26, %v791_v25 }
 0x421   :  { %1977 = vrot.lane.b32.xlu0 %v1976_v28, %s2045_s3  ;;  %1997 = vrot.lane.b32.xlu1 %v1976_v28, %s2046_s16  ;;  %v983_v33 = vadd.f32 %v972_v27, %v888_v30 }
 0x423   :  { %v1039_v42 = vadd.f32 %v1026_v10, %v983_v33 }
 0x425   :  { %v974_v62 = vpop.f32.mrf.mxu3  ;;  %v2422_v61 = vmax.f32 %v1039_v42, 0.0 }
 0x426   :  { %v879_v36 = vpop.f32.mrf.mxu2 }
 0x427   :  { %v889_v41 = vadd.f32 %v879_v36, %v793_v34 }
 0x429   :  { %v984_v35 = vadd.f32 %v974_v62, %v889_v41 }
 0x42b   :  { %v1040_v46 = vadd.f32 %v1031_v48, %v984_v35 }
 0x42d   :  { %v2424_v47 = vmax.f32 %v1040_v46, 0.0 }
 0x42f   :  { %v1991_v38 = vpack.i.bf16 %v2424_v47, %v2422_v61 }
 0x431   :  { %1992 = vrot.lane.b32.xlu0 %v1991_v38, %s2046_s16  ;;  %1972 = vrot.lane.b32.xlu2 %v1991_v38, %s2045_s3 }
 0x439   :  { %2007 = vrot.lane.b32.xlu0 %v2006_v44, %s2046_s16  ;;  %1987 = vrot.lane.b32.xlu2 %v2006_v44, %s2045_s3 }
 0x441   :  { %2002 = vrot.lane.b32.xlu2 %v1981_v9, %s2046_s16 }
 0x483   :  { %v1983_v48 = vpop.permute.xlu1 %1982 }
 0x484   :  { %v1985_v52 = vunpack.i.h.bf16 %v1983_v48  ;;  %v1984_v53 = vunpack.i.l.bf16 %v1983_v48 }
 0x486   :  { %v1058_v43 = vsel %vm1049_vm4, %v1984_v53, %v2405_v2  ;;  %v1061_v54 = vsel %vm1049_vm4, %v1985_v52, %v2407_v3 }
 0x487   :  { %v2021_v55 = vpack.i.bf16 %v1061_v54, %v1058_v43 }
 0x489   :  { %2022 = vrot.lane.b32.xlu0 %v2021_v55, %s2045_s3 }
 0x48b   :  { %v1973_v37 = vpop.permute.xlu2 %1972 }
 0x48c   :  { %v1975_v56 = vunpack.i.h.bf16 %v1973_v37  ;;  %v1974_v57 = vunpack.i.l.bf16 %v1973_v37 }
 0x48e   :  { %v1070_v58 = vsel %vm1049_vm4, %v1974_v57, %v2422_v61  ;;  %v1073_v59 = vsel %vm1049_vm4, %v1975_v56, %v2424_v47  ;;  %v1907_v57 = vld [vmem:[%s2621_s5 + $0x20] sm:$0xff] }
 0x48f   :  { %v2011_v60 = vpack.i.bf16 %v1073_v59, %v1070_v58  ;;  %v1905_v58 = vld [vmem:[%s2621_s5 + $0x10] sm:$0xff] }
 0x490   :  { %v1909_v59 = vld [vmem:[%s2621_s5 + $0x30] sm:$0xff] }
 0x491   :  { %2012 = vrot.lane.b32.xlu1 %v2011_v60, %s2045_s3  ;;  %v1903_v60 = vld [vmem:[%s2621_s5] sm:$0xff] }
 0x493   :  { %v1978_v63 = vpop.permute.xlu0 %1977  ;;  %v1988_v4 = vpop.permute.xlu2 %1987 }
 0x494   :  { %v1980_v5 = vunpack.i.h.bf16 %v1978_v63  ;;  %v1979_v6 = vunpack.i.l.bf16 %v1978_v63  ;;  %v1990_v7 = vunpack.i.h.bf16 %v1988_v4  ;;  %v1989_v8 = vunpack.i.l.bf16 %v1988_v4  ;;  %v1998_v9 = vpop.permute.xlu1 %1997  ;;  %v1908_v63 = vld [vmem:[%s2621_s5 + $0x28] sm:$0xff]  ;;  %v1906_v4 = vld [vmem:[%s2621_s5 + $0x18] sm:$0xff] }
 0x495   :  { %v2000_v10 = vunpack.i.h.bf16 %v1998_v9  ;;  %v1999_v11 = vunpack.i.l.bf16 %v1998_v9  ;;  %v1912_v9 = vld [vmem:[%s2621_s5 + $0x48] sm:$0xff] }
 0x496   :  { %v1064_v12 = vsel %vm1049_vm4, %v1979_v6, %v2412_v23  ;;  %v1067_v13 = vsel %vm1049_vm4, %v1980_v5, %v2414_v24  ;;  %v1052_v14 = vsel %vm1049_vm4, %v1989_v8, %v2432_v51  ;;  %v1055_v15 = vsel %vm1049_vm4, %v1990_v7, %v2430_v45  ;;  %v1910_v5 = vld [vmem:[%s2621_s5 + $0x38] sm:$0xff]  ;;  %v1904_v6 = vld [vmem:[%s2621_s5 + $0x8] sm:$0xff]  ;;  %v1915_v7 = vld [vmem:[%s2621_s5 + $0x60] sm:$0xff] }
 0x497   :  { %v1136_v16 = vpack.c.bf16 %v2000_v10, %v1999_v11  ;;  %v2016_v17 = vpack.i.bf16 %v1067_v13, %v1064_v12  ;;  %v2026_v18 = vpack.i.bf16 %v1055_v15, %v1052_v14  ;;  %v1913_v8 = vld [vmem:[%s2621_s5 + $0x50] sm:$0xff]  ;;  %v1911_v10 = vld [vmem:[%s2621_s5 + $0x40] sm:$0xff]  ;;  %v1916_v11 = vld [vmem:[%s2621_s5 + $0x68] sm:$0xff] }
 0x498   :  { %v1914_v12 = vld [vmem:[%s2621_s5 + $0x58] sm:$0xff] }
 0x499   :  { %1176 = vrot.lane.b32.xlu0 %v1136_v16, %s2047_s17  ;;  %2017 = vrot.lane.b32.xlu2 %v2016_v17, %s2045_s3 }
 0x49a   :  { %2027 = vrot.lane.b32.xlu1 %v2026_v18, %s2045_s3 }
 0x49b   :  { %v2003_v19 = vpop.permute.xlu2 %2002 }
 0x49c   :  { %v2005_v20 = vunpack.i.h.bf16 %v2003_v19  ;;  %v2004_v21 = vunpack.i.l.bf16 %v2003_v19 }
 0x49e   :  { %v1135_v22 = vpack.c.bf16 %v2005_v20, %v2004_v21 }
 0x4a2   :  { %1174 = vrot.lane.b32.xlu1 %v1135_v22, %s2047_s17 }
 0x4a3   :  { %v1993_v25 = vpop.permute.xlu0 %1992 }
 0x4a4   :  { %v1995_v26 = vunpack.i.h.bf16 %v1993_v25  ;;  %v1994_v27 = vunpack.i.l.bf16 %v1993_v25 }
 0x4a6   :  { %v1137_v28 = vpack.c.bf16 %v1995_v26, %v1994_v27  ;;  %v1138_v26 = vlaneseq }
 0x4a8   :  { %1178 = vrot.lane.b32.xlu2 %v1137_v28, %s2047_s17 }
 0x4ab   :  { %v2008_v30 = vpop.permute.xlu0 %2007 }
 0x4ac   :  { %v2010_v31 = vunpack.i.h.bf16 %v2008_v30  ;;  %v2009_v29 = vunpack.i.l.bf16 %v2008_v30 }
 0x4ae   :  { %v1134_v32 = vpack.c.bf16 %v2010_v31, %v2009_v29  ;;  %v2523_v31 = vand.u32 127, %v1138_v26 }
 0x4b0   :  { %1172 = vrot.lane.b32.xlu2 %v1134_v32, %s2047_s17  ;;  %vm1252_vm5 = vcmp.eq.s32.totalorder %v2523_v31, 6  ;;  %vm1207_vm6 = vcmp.eq.s32.totalorder %v2523_v31, 2  ;;  %vm1297_vm7 = vcmp.eq.s32.totalorder %v2523_v31, 10  ;;  %vm1342_vm8 = vcmp.eq.s32.totalorder %v2523_v31, 14 }
 0x4b1   :  { %vm1387_vm9 = vcmp.eq.s32.totalorder %v2523_v31, 18  ;;  %vm1432_vm10 = vcmp.eq.s32.totalorder %v2523_v31, 22  ;;  %vm1477_vm11 = vcmp.eq.s32.totalorder %v2523_v31, 26  ;;  %v1500_v31 = vld [vmem:[%s2622_s6 + $0x8] sm:$0xff] }
 0x4f3   :  { %v2018_v33 = vpop.permute.xlu2 %2017 }
 0x4f4   :  { %v2020_v34 = vunpack.i.h.bf16 %v2018_v33  ;;  %v2019_v36 = vunpack.i.l.bf16 %v2018_v33 }
 0x4f6   :  { %v1094_v40 = vsel %vm1049_vm4, %v2019_v36, %v2412_v23  ;;  %v1095_v41 = vsel %vm1049_vm4, %v2020_v34, %v2414_v24 }
 0x4f7   :  { %v1132_v62 = vpack.c.bf16 %v1095_v41, %v1094_v40 }
 0x4f9   :  { %1168 = vrot.lane.b32.xlu1 %v1132_v62, %s2047_s17 }
 0x4fb   :  { %v2023_v42 = vpop.permute.xlu0 %2022 }
 0x4fc   :  { %v2025_v35 = vunpack.i.h.bf16 %v2023_v42  ;;  %v2024_v1 = vunpack.i.l.bf16 %v2023_v42 }
 0x4fe   :  { %v1092_v46 = vsel %vm1049_vm4, %v2024_v1, %v2405_v2  ;;  %v1093_v0 = vsel %vm1049_vm4, %v2025_v35, %v2407_v3 }
 0x4ff   :  { %v1131_v49 = vpack.c.bf16 %v1093_v0, %v1092_v46 }
 0x501   :  { %1166 = vrot.lane.b32.xlu2 %v1131_v49, %s2047_s17 }
 0x502   :  { %v1179_v38 = vpop.permute.xlu2 %1178 }
 0x503   :  { %1188 = vmatpush.bf16.msra.mxu0 %v1179_v38  ;;  %1233 = vmatpush.bf16.msra.mxu1 %v1179_v38  ;;  %v2013_v23 = vpop.permute.xlu1 %2012 }
 0x504   :  { %1278 = vmatpush.bf16.msra.mxu2 %v1179_v38  ;;  %1323 = vmatpush.bf16.msra.mxu3 %v1179_v38  ;;  %v2015_v24 = vunpack.i.h.bf16 %v2013_v23  ;;  %v2014_v39 = vunpack.i.l.bf16 %v2013_v23 }
 0x506   :  { %v1096_v50 = vsel %vm1049_vm4, %v2014_v39, %v2422_v61  ;;  %v1097_v2 = vsel %vm1049_vm4, %v2015_v24, %v2424_v47 }
 0x507   :  { %v1133_v44 = vpack.c.bf16 %v1097_v2, %v1096_v50 }
 0x509   :  { %1170 = vrot.lane.b32.xlu0 %v1133_v44, %s2047_s17 }
 0x50a   :  { %v1173_v55 = vpop.permute.xlu2 %1172 }
 0x50b   :  { %v1177_v3 = vpop.permute.xlu0 %1176 }
 0x50c   :  { %v2028_v48 = vpop.permute.xlu1 %2027  ;;  %1189 = vmatpush.bf16.msra.mxu0 %v1177_v3  ;;  %1234 = vmatpush.bf16.msra.mxu1 %v1177_v3 }
 0x50d   :  { %v2030_v52 = vunpack.i.h.bf16 %v2028_v48  ;;  %v2029_v53 = vunpack.i.l.bf16 %v2028_v48  ;;  %1279 = vmatpush.bf16.msra.mxu2 %v1177_v3  ;;  %1324 = vmatpush.bf16.msra.mxu3 %v1177_v3 }
 0x50f   :  { %v1090_v43 = vsel %vm1049_vm4, %v2029_v53, %v2432_v51  ;;  %v1091_v61 = vsel %vm1049_vm4, %v2030_v52, %v2430_v45 }
 0x510   :  { %v1130_v54 = vpack.c.bf16 %v1091_v61, %v1090_v43 }
 0x512   :  { %1164 = vrot.lane.b32.xlu0 %v1130_v54, %s2047_s17 }
 0x514   :  { %v1175_v47 = vpop.permute.xlu1 %1174 }
 0x515   :  { %1190 = vmatpush.bf16.msra.mxu0 %v1175_v47  ;;  %1235 = vmatpush.bf16.msra.mxu1 %v1175_v47 }
 0x516   :  { %1280 = vmatpush.bf16.msra.mxu2 %v1175_v47  ;;  %1325 = vmatpush.bf16.msra.mxu3 %v1175_v47 }
 0x519   :  { %1191 = vmatpush.bf16.msra.mxu0 %v1173_v55  ;;  %1236 = vmatpush.bf16.msra.mxu1 %v1173_v55 }
 0x51a   :  { %1281 = vmatpush.bf16.msra.mxu2 %v1173_v55  ;;  %1326 = vmatpush.bf16.msra.mxu3 %v1173_v55 }
 0x55b   :  { %v1167_v45 = vpop.permute.xlu2 %1166 }
 0x56b   :  { %v1169_v51 = vpop.permute.xlu1 %1168 }
 0x57b   :  { %v1171_v37 = vpop.permute.xlu0 %1170 }
 0x57c   :  { %1192 = vmatpush.bf16.msra.mxu0 %v1171_v37  ;;  %1237 = vmatpush.bf16.msra.mxu1 %v1171_v37 }
 0x57d   :  { %1282 = vmatpush.bf16.msra.mxu2 %v1171_v37  ;;  %1327 = vmatpush.bf16.msra.mxu3 %v1171_v37 }
 0x580   :  { %1193 = vmatpush.bf16.msra.mxu0 %v1169_v51  ;;  %1238 = vmatpush.bf16.msra.mxu1 %v1169_v51 }
 0x581   :  { %1283 = vmatpush.bf16.msra.mxu2 %v1169_v51  ;;  %1328 = vmatpush.bf16.msra.mxu3 %v1169_v51 }
 0x584   :  { %1194 = vmatpush.bf16.msra.mxu0 %v1167_v45  ;;  %1239 = vmatpush.bf16.msra.mxu1 %v1167_v45  ;;  %v1165_v56 = vpop.permute.xlu0 %1164 }
 0x585   :  { %1284 = vmatpush.bf16.msra.mxu2 %v1167_v45  ;;  %1329 = vmatpush.bf16.msra.mxu3 %v1167_v45 }
 0x588   :  { %1195 = vmatpush.bf16.msra.mxu0 %v1165_v56  ;;  %1240 = vmatpush.bf16.msra.mxu1 %v1165_v56 }
 0x589   :  { %1285 = vmatpush.bf16.msra.mxu2 %v1165_v56  ;;  %1330 = vmatpush.bf16.msra.mxu3 %v1165_v56 }
 0x58b   :  { %1241 = vmatmul.bf16.vlgmr.msra.gmra.mxu1 %v1905_v58  ;;  %1196 = vmatmul.bf16.vlgmr.msra.gmra.mxu0 %v1903_v60 }
 0x58c   :  { %1368 = vmatpush.bf16.msrb.mxu0 %v1179_v38  ;;  %1413 = vmatpush.bf16.msrb.mxu1 %v1179_v38 }
 0x58d   :  { %1917 = vmatpush.bf16.msrb.mxu3 %v1179_v38  ;;  %1458 = vmatpush.bf16.msrb.mxu2 %v1179_v38 }
 0x58e   :  { %1286 = vmatmul.bf16.vlgmr.msra.gmra.mxu2 %v1907_v57  ;;  %1331 = vmatmul.bf16.vlgmr.msra.gmra.mxu3 %v1909_v59 }
 0x590   :  { %1369 = vmatpush.bf16.msrb.mxu0 %v1177_v3  ;;  %1414 = vmatpush.bf16.msrb.mxu1 %v1177_v3 }
 0x591   :  { %1918 = vmatpush.bf16.msrb.mxu3 %v1177_v3  ;;  %1459 = vmatpush.bf16.msrb.mxu2 %v1177_v3 }
 0x594   :  { %1370 = vmatpush.bf16.msrb.mxu0 %v1175_v47  ;;  %1415 = vmatpush.bf16.msrb.mxu1 %v1175_v47 }
 0x595   :  { %1919 = vmatpush.bf16.msrb.mxu3 %v1175_v47  ;;  %1460 = vmatpush.bf16.msrb.mxu2 %v1175_v47 }
 0x598   :  { %1371 = vmatpush.bf16.msrb.mxu0 %v1173_v55  ;;  %1416 = vmatpush.bf16.msrb.mxu1 %v1173_v55 }
 0x599   :  { %1920 = vmatpush.bf16.msrb.mxu3 %v1173_v55  ;;  %1461 = vmatpush.bf16.msrb.mxu2 %v1173_v55 }
 0x59b   :  { %1246 = vmatmul.bf16.gmra.mxu1 %v1906_v4  ;;  %1201 = vmatmul.bf16.gmra.mxu0 %v1904_v6 }
 0x59c   :  { %1372 = vmatpush.bf16.msrb.mxu0 %v1171_v37  ;;  %1417 = vmatpush.bf16.msrb.mxu1 %v1171_v37 }
 0x59d   :  { %1921 = vmatpush.bf16.msrb.mxu3 %v1171_v37  ;;  %1462 = vmatpush.bf16.msrb.mxu2 %v1171_v37 }
 0x59e   :  { %1291 = vmatmul.bf16.gmra.mxu2 %v1908_v63  ;;  %1336 = vmatmul.bf16.gmra.mxu3 %v1910_v5 }
 0x5a0   :  { %1373 = vmatpush.bf16.msrb.mxu0 %v1169_v51  ;;  %1418 = vmatpush.bf16.msrb.mxu1 %v1169_v51 }
 0x5a1   :  { %1922 = vmatpush.bf16.msrb.mxu3 %v1169_v51  ;;  %1463 = vmatpush.bf16.msrb.mxu2 %v1169_v51 }
 0x5a4   :  { %1374 = vmatpush.bf16.msrb.mxu0 %v1167_v45  ;;  %1419 = vmatpush.bf16.msrb.mxu1 %v1167_v45 }
 0x5a5   :  { %1923 = vmatpush.bf16.msrb.mxu3 %v1167_v45  ;;  %1464 = vmatpush.bf16.msrb.mxu2 %v1167_v45 }
 0x5a8   :  { %1375 = vmatpush.bf16.msrb.mxu0 %v1165_v56  ;;  %1420 = vmatpush.bf16.msrb.mxu1 %v1165_v56 }
 0x5a9   :  { %1924 = vmatpush.bf16.msrb.mxu3 %v1165_v56  ;;  %1465 = vmatpush.bf16.msrb.mxu2 %v1165_v56 }
 0x5ab   :  { %1421 = vmatmul.bf16.vlgmr.msrb.gmra.mxu1 %v1913_v8  ;;  %1376 = vmatmul.bf16.vlgmr.msrb.gmra.mxu0 %v1911_v10 }
 0x5ae   :  { %1466 = vmatmul.bf16.vlgmr.msrb.gmra.mxu2 %v1915_v7  ;;  %1381 = vmatmul.bf16.vlgmr.msrb.gmra.mxu3 %v1912_v9 }
 0x5bb   :  { %1426 = vmatmul.bf16.gmra.mxu1 %v1914_v12 }
 0x5be   :  { %1471 = vmatmul.bf16.gmra.mxu2 %v1916_v11 }
 0x608   :  { %v1242_v13 = vpop.f32.mrf.mxu1  ;;  %v1197_v14 = vpop.f32.mrf.mxu0 }
 0x609   :  { %v1253_v50 = vsel %vm1252_vm5, %v1242_v13, 0.0  ;;  %v1208_v2 = vsel %vm1207_vm6, %v1197_v14, 0.0 }
 0x60a   :  { %v1257_v53 = vadd.f32 %v1253_v50, %v1208_v2 }
 0x610   :  { %v1244_v17 = vpop.f32.mrf.mxu1  ;;  %v1199_v18 = vpop.f32.mrf.mxu0 }
 0x611   :  { %v1287_v15 = vpop.f32.mrf.mxu2  ;;  %v1332_v16 = vpop.f32.mrf.mxu3  ;;  %v1254_v32 = vsel %vm1252_vm5, %v1244_v17, 0.0  ;;  %v1209_v33 = vsel %vm1207_vm6, %v1199_v18, 0.0 }
 0x612   :  { %v1258_v62 = vadd.f32 %v1254_v32, %v1209_v33  ;;  %v1298_v47 = vsel %vm1297_vm7, %v1287_v15, 0.0  ;;  %v1343_v4 = vsel %vm1342_vm8, %v1332_v16, 0.0 }
 0x613   :  { %v1302_v59 = vadd.f32 %v1298_v47, %v1257_v53 }
 0x615   :  { %v1347_v10 = vadd.f32 %v1343_v4, %v1302_v59 }
 0x618   :  { %v1247_v21 = vpop.f32.mrf.mxu1  ;;  %v1202_v22 = vpop.f32.mrf.mxu0 }
 0x619   :  { %v1289_v19 = vpop.f32.mrf.mxu2  ;;  %v1334_v20 = vpop.f32.mrf.mxu3  ;;  %v1255_v46 = vsel %vm1252_vm5, %v1247_v21, 0.0  ;;  %v1210_v0 = vsel %vm1207_vm6, %v1202_v22, 0.0 }
 0x61a   :  { %v1299_v40 = vsel %vm1297_vm7, %v1289_v19, 0.0  ;;  %v1344_v35 = vsel %vm1342_vm8, %v1334_v20, 0.0  ;;  %v1259_v24 = vadd.f32 %v1255_v46, %v1210_v0 }
 0x61b   :  { %v1303_v42 = vadd.f32 %v1299_v40, %v1258_v62 }
 0x61d   :  { %v1348_v38 = vadd.f32 %v1344_v35, %v1303_v42  ;;  %v1501_v42 = vld [vmem:[%s2622_s6 + $0x10] sm:$0xff]  ;;  %v1502_v35 = vld [vmem:[%s2622_s6 + $0x18] sm:$0xff] }
 0x620   :  { %v1249_v27 = vpop.f32.mrf.mxu1  ;;  %v1204_v30 = vpop.f32.mrf.mxu0 }
 0x621   :  { %v1292_v25 = vpop.f32.mrf.mxu2  ;;  %v1337_v28 = vpop.f32.mrf.mxu3  ;;  %v1256_v56 = vsel %vm1252_vm5, %v1249_v27, 0.0  ;;  %v1211_v57 = vsel %vm1207_vm6, %v1204_v30, 0.0 }
 0x622   :  { %v1300_v44 = vsel %vm1297_vm7, %v1292_v25, 0.0  ;;  %v1345_v55 = vsel %vm1342_vm8, %v1337_v28, 0.0  ;;  %v1260_v7 = vadd.f32 %v1256_v56, %v1211_v57 }
 0x623   :  { %v1304_v43 = vadd.f32 %v1300_v44, %v1259_v24 }
 0x625   :  { %v1349_v60 = vadd.f32 %v1345_v55, %v1304_v43 }
 0x628   :  { %v1422_v34 = vpop.f32.mrf.mxu1  ;;  %v1377_v36 = vpop.f32.mrf.mxu0 }
 0x629   :  { %v1294_v29 = vpop.f32.mrf.mxu2  ;;  %v1339_v41 = vpop.f32.mrf.mxu3  ;;  %v1388_v9 = vsel %vm1387_vm9, %v1377_v36, 0.0  ;;  %v1433_v20 = vsel %vm1432_vm10, %v1422_v34, 0.0 }
 0x62a   :  { %v1301_v5 = vsel %vm1297_vm7, %v1294_v29, 0.0  ;;  %v1346_v15 = vsel %vm1342_vm8, %v1339_v41, 0.0  ;;  %v1392_v17 = vadd.f32 %v1388_v9, %v1347_v10 }
 0x62b   :  { %v1305_v11 = vadd.f32 %v1301_v5, %v1260_v7 }
 0x62c   :  { %v1437_v28 = vadd.f32 %v1433_v20, %v1392_v17 }
 0x62d   :  { %v1350_v22 = vadd.f32 %v1346_v15, %v1305_v11 }
 0x630   :  { %v1424_v49 = vpop.f32.mrf.mxu1  ;;  %v1379_v23 = vpop.f32.mrf.mxu0 }
 0x631   :  { %v1467_v1 = vpop.f32.mrf.mxu2  ;;  %v1389_v39 = vsel %vm1387_vm9, %v1379_v23, 0.0  ;;  %v1382_v48 = vpop.f32.mrf.mxu3  ;;  %v1434_v52 = vsel %vm1432_vm10, %v1424_v49, 0.0 }
 0x632   :  { %v1393_v3 = vadd.f32 %v1389_v39, %v1348_v38  ;;  %v1390_v58 = vsel %vm1387_vm9, %v1382_v48, 0.0  ;;  %v1478_v26 = vsel %vm1477_vm11, %v1467_v1, 0.0  ;;  %v1499_v38 = vld [vmem:[%s2622_s6] sm:$0xff] }
 0x633   :  { %v1394_v8 = vadd.f32 %v1390_v58, %v1349_v60  ;;  %v1482_v33 = vadd.f32 %v1478_v26, %v1437_v28  ;;  %v1511_v48 = vld [vmem:[%s2623_s7] sm:$0xf] }
 0x634   :  { %v1438_v54 = vadd.f32 %v1434_v52, %v1393_v3  ;;  %v1512_v52 = vld [vmem:[%s2624_s8] sm:$0xf] }
 0x635   :  { %v1487_v40 = vsel %vm1486_vm12, %v1482_v33, 0.0 }
 0x638   :  { %v1427_v51 = vpop.f32.mrf.mxu1 }
 0x639   :  { %v1469_v61 = vpop.f32.mrf.mxu2  ;;  %v1435_v6 = vsel %vm1432_vm10, %v1427_v51, 0.0  ;;  %v1384_v14 = vpop.f32.mrf.mxu3 }
 0x63a   :  { %v1479_v37 = vsel %vm1477_vm11, %v1469_v61, 0.0  ;;  %v1439_v12 = vadd.f32 %v1435_v6, %v1394_v8  ;;  %v1391_v21 = vsel %vm1387_vm9, %v1384_v14, 0.0 }
 0x63b   :  { %v1483_v45 = vadd.f32 %v1479_v37, %v1438_v54  ;;  %v1395_v30 = vadd.f32 %v1391_v21, %v1350_v22 }
 0x63d   :  { %v1490_v63 = vsel %vm1486_vm12, %v1483_v45, 0.0 }
 0x63e   :  { %1491 = vadd.xlane.f32.xlu0 %v1490_v63 }
 0x640   :  { %v1429_v19 = vpop.f32.mrf.mxu1 }
 0x641   :  { %v1472_v13 = vpop.f32.mrf.mxu2  ;;  %v1436_v27 = vsel %vm1432_vm10, %v1429_v19, 0.0 }
 0x642   :  { %v1480_v16 = vsel %vm1477_vm11, %v1472_v13, 0.0  ;;  %v1440_v29 = vadd.f32 %v1436_v27, %v1395_v30 }
 0x643   :  { %v1484_v18 = vadd.f32 %v1480_v16, %v1439_v12 }
 0x645   :  { %v1493_v25 = vsel %vm1486_vm12, %v1484_v18, 0.0 }
 0x646   :  { %1494 = vadd.xlane.f32.xlu2 %v1493_v25 }
 0x649   :  { %v1474_v32 = vpop.f32.mrf.mxu2 }
 0x64a   :  { %v1481_v34 = vsel %vm1477_vm11, %v1474_v32, 0.0 }
 0x64b   :  { %v1485_v36 = vadd.f32 %v1481_v34, %v1440_v29 }
 0x64d   :  { %v1496_v41 = vsel %vm1486_vm12, %v1485_v36, 0.0 }
 0x64e   :  { %1488 = vadd.xlane.f32.xlu2 %v1487_v40  ;;  %1497 = vadd.xlane.f32.xlu1 %v1496_v41 }
 0x6b1   :  { %v1492_v1 = vpop.xlane.xlu0 %1491 }
 0x6b2   :  { %v1504_v24 = vadd.f32 %v1500_v31, %v1492_v1 }
 0x6b4   :  { %v1508_v44 = vmax.f32 %v1504_v24, 0.0 }
 0x6b9   :  { %v1495_v62 = vpop.xlane.xlu2 %1494 }
 0x6ba   :  { %v1505_v0 = vadd.f32 %v1501_v42, %v1495_v62 }
 0x6bc   :  { %v1509_v50 = vmax.f32 %v1505_v0, 0.0 }
 0x6c1   :  { %v1498_v46 = vpop.xlane.xlu1 %1497  ;;  %v1489_v23 = vpop.xlane.xlu2 %1488 }
 0x6c2   :  { %v1506_v49 = vadd.f32 %v1502_v35, %v1498_v46  ;;  %v1503_v2 = vadd.f32 %v1499_v38, %v1489_v23 }
 0x6c4   :  { %v1510_v39 = vmax.f32 %v1506_v49, 0.0  ;;  %v1507_v3 = vmax.f32 %v1503_v2, 0.0 }
 0x6c6   :  { %1529 = vmatpush.msra.mxu3 %v1510_v39 }
 0x6c8   :  { %1530 = vmatpush.msra.mxu3 %v1509_v50 }
 0x6ca   :  { %1531 = vmatpush.msra.mxu3 %v1508_v44 }
 0x6cc   :  { %1532 = vmatpush.msra.mxu3 %v1507_v3 }
 0x6cd   :  { %1870 = vmatmul.msk.f32.vlgmr.msra.gmra.mxu3 %vm1513_vm13, %v1511_v48 }
 0x750   :  { %v1534_v53 = vpop.f32.mrf.mxu3 }
 0x751   :  { %v1535_v43 = vadd.f32 %v1534_v53, %v1512_v52 }
 0x753   :  { %v1538_v61 = vsel %vm1537_vm14, %v1535_v43, -inf }
 0x754   :  { %v1539_v54 = vrot.slane %v1538_v61, 4 }
 0x756   :  { %v1540_v47 = vmax.f32 %v1538_v61, %v1539_v54 }
 0x758   :  { %v1541_v55 = vrot.slane %v1540_v47, 2 }
 0x75a   :  { %v1542_v37 = vmax.f32 %v1540_v47, %v1541_v55 }
 0x75c   :  { %v1543_v51 = vrot.slane %v1542_v37, 1 }
 0x75e   :  { %v1544_v45 = vmax.f32 %v1542_v37, %v1543_v51 }
 0x760   :  { %v1545_v56 = vsub.f32 %v1535_v43, %v1544_v45 }
 0x762   :  { %v1546_v57 = vmul.f32 1.442695, %v1545_v56 }
 0x764   :  { %2031 = vpow2.f32 %v1546_v57 }
 0x76a   :  { %v2032_v58 = vpop.eup %2031 }
 0x76b   :  { %v1548_v59 = vsel %vm1537_vm14, %v2032_v58, 0.0 }
 0x76c   :  { %v1549_v60 = vrot.slane %v1548_v59, 4 }
 0x76e   :  { %v1550_v63 = vadd.f32 %v1549_v60, %v1548_v59 }
 0x770   :  { %v1551_v4 = vrot.slane %v1550_v63, 2 }
 0x772   :  { %v1552_v5 = vadd.f32 %v1551_v4, %v1550_v63 }
 0x774   :  { %v1553_v6 = vrot.slane %v1552_v5, 1 }
 0x776   :  { %v1554_v7 = vadd.f32 %v1553_v6, %v1552_v5 }
 0x778   :  { %2033 = vrcp.f32 %v1554_v7  ;;  %v1566_v11 = vand.u32 2147483648, %v1554_v7  ;;  %v1564_v13 = vand.u32 2147483647, %v1554_v7  ;;  %vm1560_vm0 = vweird.f32 %v1554_v7 }
 0x77a   :  { %v1567_v15 = vor.u32 1.1754944e-38, %v1566_v11  ;;  %vm1565_vm2 = vcmp.eq.f32.partialorder %v1564_v13, 8.507059e+37 }
 0x77e   :  { %v2034_v8 = vpop.eup %2033 }
 0x77f   :  { %v1556_v9 = vmul.f32 %v2034_v8, %v1554_v7  ;;  %vm1561_vm15 = vweird.f32 %v2034_v8 }
 0x780   :  { %vm1562_vm1 = vmor %vm1560_vm0, %vm1561_vm15 }
 0x781   :  { %v1557_v10 = vsub.f32 1.0, %v1556_v9 }
 0x783   :  { %v1558_v12 = vmul.f32 %v2034_v8, %v1557_v10 }
 0x785   :  { %v1559_v14 = vadd.f32 %v2034_v8, %v1558_v12 }
 0x787   :  { %v1563_v16 = vsel %vm1562_vm1, %v2034_v8, %v1559_v14 }
 0x788   :  { %v1568_v17 = vsel %vm1565_vm2, %v1567_v15, %v1563_v16 }
 0x789   :  { %v1569_v18 = vmul.f32 %v2032_v58, %v1568_v17 }
 0x78b   :  { %1570 = vst.msk [vmem:[%s2625_s9] sm:$0xf] %vm1537_vm14, %v1569_v18 }

</bundles_post_ra>
